<compile_context>
chip_gen: v6e
topology: v6e:2x2x1
jax: 0.10.0
libtpu: 0.0.40
codegen_flags: <defaults>
</compile_context>

<pallas_src>
import jax
import jax.numpy as jnp
import numpy as np
from jax.experimental import pallas as pl
from jax.experimental.pallas import tpu as pltpu


def _round_up(x, m):
    return (x + m - 1) // m * m


def _sigmoid(x):
    # Exact tanh identity: guaranteed Mosaic lowering, runs on the EUP.
    return 0.5 * (jnp.tanh(0.5 * x) + 1.0)


# -----------------------------------------------------------------------------------------------
# Kernel: one decoder step per grid iteration; h/c carried in VMEM scratch across iterations.
# -----------------------------------------------------------------------------------------------
def _attn_decoder_kernel(xf_ref, h0_ref, c0_ref, ctx_ref, bias_ref,
                         w_x_ref, w_h_ref, b_lstm_ref,
                         w_hstk_ref, w_out_ctx_ref, w_dec_ref, b_dec_ref,
                         out_ref,
                         h_scr, c_scr):
    f32, bf16 = jnp.float32, jnp.bfloat16
    Bp, Hp = h_scr.shape
    S = ctx_ref.shape[1]
    A = b_dec_ref.shape[1]
    W = out_ref.shape[2]

    # Initialize the carried state from the user-provided h_0 / c_0 on the first step only.
    @pl.when(pl.program_id(0) == 0)
    def _():
        h_scr[...] = h0_ref[...]
        c_scr[...] = c0_ref[...]

    h_prev = h_scr[...]
    c_prev = c_scr[...]

    # ---- LSTMCell: gates = [emb|feature] @ Wx + h_prev @ Wh + b   (bf16 on MXU, f32 acc)
    gates = (jnp.dot(xf_ref[0], w_x_ref[...], preferred_element_type=f32)
             + jnp.dot(h_prev.astype(bf16), w_h_ref[...], preferred_element_type=f32)
             + b_lstm_ref[...])                                           # (Bp, 4*Hp)
    i_g = _sigmoid(gates[:, 0 * Hp:1 * Hp])
    f_g = _sigmoid(gates[:, 1 * Hp:2 * Hp])
    g_g = jnp.tanh(gates[:, 2 * Hp:3 * Hp])
    o_g = _sigmoid(gates[:, 3 * Hp:4 * Hp])
    c_1 = f_g * c_prev + i_g * g_g                                        # (Bp, Hp) f32
    h_1 = o_g * jnp.tanh(c_1)                                             # (Bp, Hp) f32

    # ---- SoftDotAttention: one stacked matmul gives [target | linear_out-h-part]
    to = jnp.dot(h_1.astype(bf16), w_hstk_ref[...], preferred_element_type=f32)  # (Bp, 2*Hp)
    target = to[:, :Hp]
    out_h = to[:, Hp:]

    ctx = ctx_ref[...]                                                    # (Bp, S, Hp) f32
    logits = jnp.sum(ctx * target[:, None, :], axis=-1) + bias_ref[...]   # (Bp, S)
    m = jnp.max(logits, axis=1, keepdims=True)
    e = jnp.exp(logits - m)
    attn = e * pl.reciprocal(jnp.sum(e, axis=1, keepdims=True), approx=True)   # (Bp, S)
    wctx = jnp.sum(attn[:, :, None] * ctx, axis=1)                        # (Bp, Hp)

    h_tilde = jnp.tanh(
        jnp.dot(wctx.astype(bf16), w_out_ctx_ref[...], preferred_element_type=f32) + out_h)

    # ---- decoder2action
    logit = (jnp.dot(h_tilde.astype(bf16), w_dec_ref[...], preferred_element_type=f32)
             + b_dec_ref[...])                                            # (Bp, A)

    # carry state for the next grid step
    h_scr[...] = h_1
    c_scr[...] = c_1

    # ---- ONE lane-dense store of the packed slab [h_1 | c_1 | alpha | logit | zero pad]
    pieces = [h_1, c_1, attn, logit]
    pad = W - (2 * Hp + S + A)
    if pad:
        pieces.append(jnp.zeros((Bp, pad), f32))
    out_ref[0, :, :] = jnp.concatenate(pieces, axis=1)


# -----------------------------------------------------------------------------------------------
# Parameter repacking (done ONCE): transpose / gate-stack / pad hidden dim to 128 / bf16 cast.
# -----------------------------------------------------------------------------------------------
def make_params(emb_table, w_ih, w_hh, b_ih, b_hh, w_attn_in, w_attn_out, w_dec, b_dec, Hp=128):
    H = w_hh.shape[1]
    EF = w_ih.shape[1]
    EFp = _round_up(EF, 128)
    ph = Hp - H

    def gate_pack(w, in_pad):
        # w: (4H, K) PyTorch gate-stacked (i,f,g,o) -> (K + in_pad, 4*Hp) bf16, per-gate padded.
        w4 = w.reshape(4, H, w.shape[1])
        w4 = jnp.pad(w4, ((0, 0), (0, ph), (0, 0)))
        wt = jnp.transpose(w4, (2, 0, 1)).reshape(w.shape[1], 4 * Hp)
        return jnp.pad(wt, ((0, in_pad), (0, 0))).astype(jnp.bfloat16)

    pad2 = lambda w: jnp.pad(w, ((0, ph), (0, ph)))

    w_in_t = pad2(w_attn_in.T)                       # (Hp, Hp)  h -> target
    w_out_ctx = pad2(w_attn_out[:, :H].T)            # (Hp, Hp)  weighted_context part
    w_out_h = pad2(w_attn_out[:, H:].T)              # (Hp, Hp)  h part
    return dict(
        emb=emb_table.astype(jnp.float32),                                     # (V, E)
        w_x=gate_pack(w_ih, EFp - EF),                                          # (EFp, 4Hp)
        w_h=gate_pack(w_hh, ph),                                                # (Hp, 4Hp)
        b_lstm=jnp.pad((b_ih + b_hh).reshape(4, H),
                       ((0, 0), (0, ph))).reshape(1, 4 * Hp).astype(jnp.float32),
        w_hstk=jnp.concatenate([w_in_t, w_out_h], axis=1).astype(jnp.bfloat16),  # (Hp, 2Hp)
        w_out_ctx=w_out_ctx.astype(jnp.bfloat16),                               # (Hp, Hp)
        w_dec=jnp.pad(w_dec.T, ((0, ph), (0, 0))).astype(jnp.bfloat16),          # (Hp, A)
        b_dec=b_dec.reshape(1, -1).astype(jnp.float32),                          # (1, A)
    )


# -----------------------------------------------------------------------------------------------
# Wrappers.
# -----------------------------------------------------------------------------------------------
def attn_decoder_rollout(params, actions, features, h_0, c_0, ctx, ctx_mask=None):
    """T fused decoder steps (teacher-forced actions/features).

    actions : (T, B, 1) or (T, B) int    features: (T, B, F)
    h_0/c_0 : (B, H)                      ctx: (B, S, H)    ctx_mask: (B, S) bool or None
    Returns per-step (h, c, alpha, logit) with leading T axis.
    """
    B, H = h_0.shape
    S = ctx.shape[1]
    Hp = params['w_out_ctx'].shape[0]
    A = params['b_dec'].shape[1]
    EFp = params['w_x'].shape[0]
    T = features.shape[0]
    Bp = max(_round_up(B, 8), 8)
    W_out = _round_up(2 * Hp + S + A, 128)

    # Embedding gather + [emb | feature] stacking + bf16 cast in the wrapper (cheap under jit).
    acts = actions.reshape(T, B).astype(jnp.int32)
    emb = jnp.take(params['emb'], acts, axis=0)                            # (T, B, E)
    xf = jnp.concatenate([emb, features.astype(jnp.float32)], axis=-1)     # (T, B, E+F)
    xf = jnp.pad(xf, ((0, 0), (0, Bp - B), (0, EFp - xf.shape[-1]))).astype(jnp.bfloat16)

    h0 = jnp.pad(h_0.astype(jnp.float32), ((0, Bp - B), (0, Hp - H)))
    c0 = jnp.pad(c_0.astype(jnp.float32), ((0, Bp - B), (0, Hp - H)))
    ctx_p = jnp.pad(ctx.astype(jnp.float32), ((0, Bp - B), (0, 0), (0, Hp - H)))
    if ctx_mask is None:
        bias = jnp.zeros((Bp, S), jnp.float32)
    else:
        bias = jnp.where(ctx_mask, jnp.float32(-1e30), jnp.float32(0.0))
        bias = jnp.pad(bias, ((0, Bp - B), (0, 0)))

    weights = (params['w_x'], params['w_h'], params['b_lstm'],
               params['w_hstk'], params['w_out_ctx'], params['w_dec'], params['b_dec'])

    # Advisory cost estimate (lets XLA overlap the call with the surrounding gather/concat).
    flops = int(2 * T * Bp * (EFp * 4 * Hp + Hp * 4 * Hp + Hp * 2 * Hp + Hp * Hp + Hp * A)
                + 4 * T * Bp * S * Hp)
    transcendentals = int(T * Bp * (5 * Hp + S))
    bytes_accessed = int(xf.size * 2 + (h0.size + c0.size + ctx_p.size + bias.size) * 4
                         + sum(int(w.size) * w.dtype.itemsize for w in weights)
                         + T * Bp * W_out * 4)

    full = lambda shape: pl.BlockSpec(shape, lambda t, _n=len(shape): (0,) * _n)

    out = pl.pallas_call(
        _attn_decoder_kernel,
        out_shape=jax.ShapeDtypeStruct((T, Bp, W_out), jnp.float32),
        grid_spec=pltpu.PrefetchScalarGridSpec(
            num_scalar_prefetch=0,
            grid=(T,),
            in_specs=[
                pl.BlockSpec((1, Bp, EFp), lambda t: (t, 0, 0)),   # per-step LSTM input (bf16)
                full((Bp, Hp)),                                    # h_0 (resident)
                full((Bp, Hp)),                                    # c_0 (resident)
                full((Bp, S, Hp)),                                 # ctx (resident)
                full((Bp, S)),                                     # mask bias (resident)
                full((EFp, 4 * Hp)),                               # w_x
                full((Hp, 4 * Hp)),                                # w_h
                full((1, 4 * Hp)),                                 # b_lstm
                full((Hp, 2 * Hp)),                                # [w_in | w_out_h] stacked
                full((Hp, Hp)),                                    # w_out_ctx
                full((Hp, A)),                                     # w_dec
                full((1, A)),                                      # b_dec
            ],
            out_specs=pl.BlockSpec((1, Bp, W_out), lambda t: (t, 0, 0)),
            scratch_shapes=[pltpu.VMEM((Bp, Hp), jnp.float32),     # carried h
                            pltpu.VMEM((Bp, Hp), jnp.float32)],    # carried c
        ),
        compiler_params=pltpu.CompilerParams(dimension_semantics=("arbitrary",)),
        cost_estimate=pl.CostEstimate(flops=flops, transcendentals=transcendentals,
                                      bytes_accessed=bytes_accessed),
    )(xf, h0, c0, ctx_p, bias, *weights)

    h = out[:, :B, 0:H]
    c = out[:, :B, Hp:Hp + H]
    alpha = out[:, :B, 2 * Hp:2 * Hp + S]
    logit = out[:, :B, 2 * Hp + S:2 * Hp + S + A]
    return h, c, alpha, logit


def attn_decoder_step(params, action, feature, h_0, c_0, ctx, ctx_mask=None):
    """One AttnDecoderLSTM.forward step (original module semantics). Returns (h_1, c_1, alpha, logit)."""
    h, c, a, l = attn_decoder_rollout(params, action[None], feature[None], h_0, c_0, ctx, ctx_mask)
    return h[0], c[0], a[0], l[0]


# -----------------------------------------------------------------------------------------------
# Pure-JAX f32 reference (eval mode).
# -----------------------------------------------------------------------------------------------
def _reference_step(w, action, feature, h_0, c_0, ctx, ctx_mask=None):
    emb_table, w_ih, w_hh, b_ih, b_hh, w_attn_in, w_attn_out, w_dec, b_dec = w
    H = h_0.shape[1]
    a_emb = emb_table[action.reshape(-1)]
    x = jnp.concatenate([a_emb, feature], axis=1)
    gates = x @ w_ih.T + b_ih + h_0 @ w_hh.T + b_hh
    i = jax.nn.sigmoid(gates[:, 0 * H:1 * H])
    f = jax.nn.sigmoid(gates[:, 1 * H:2 * H])
    g = jnp.tanh(gates[:, 2 * H:3 * H])
    o = jax.nn.sigmoid(gates[:, 3 * H:4 * H])
    c_1 = f * c_0 + i * g
    h_1 = o * jnp.tanh(c_1)
    target = h_1 @ w_attn_in.T
    logits = jnp.einsum('bsh,bh->bs', ctx, target)
    if ctx_mask is not None:
        logits = jnp.where(ctx_mask, -jnp.inf, logits)
    attn = jax.nn.softmax(logits, axis=1)
    wctx = jnp.einsum('bs,bsh->bh', attn, ctx)
    h_tilde = jnp.tanh(jnp.concatenate([wctx, h_1], axis=1) @ w_attn_out.T)
    logit = h_tilde @ w_dec.T + b_dec
    return h_1, c_1, attn, logit


def _reference_rollout(w, actions, features, h_0, c_0, ctx, ctx_mask=None):
    hs, cs, als, lgs = [], [], [], []
    h, c = h_0, c_0
    for t in range(features.shape[0]):
        h, c, a, l = _reference_step(w, actions[t], features[t], h, c, ctx, ctx_mask)
        hs.append(h); cs.append(c); als.append(a); lgs.append(l)
    return jnp.stack(hs), jnp.stack(cs), jnp.stack(als), jnp.stack(lgs)


if __name__ == "__main__":
    # Small shapes consistent with the module (feature_size shrunk from the 2048 default).
    B = 2
    T = 4
    input_action_size = 10
    output_action_size = 8
    embedding_size = 32
    hidden_size = 64
    feature_size = 256
    seq_len = 8

    key = jax.random.PRNGKey(0)
    ks = jax.random.split(key, 16)
    kit = iter(ks)

    def unif(k, shape, fan_in):
        b = 1.0 / np.sqrt(fan_in)
        return jax.random.uniform(k, shape, jnp.float32, -b, b)

    in_dim = embedding_size + feature_size
    emb_table = jax.random.normal(next(kit), (input_action_size, embedding_size), jnp.float32)
    w_ih = unif(next(kit), (4 * hidden_size, in_dim), hidden_size)
    w_hh = unif(next(kit), (4 * hidden_size, hidden_size), hidden_size)
    b_ih = unif(next(kit), (4 * hidden_size,), hidden_size)
    b_hh = unif(next(kit), (4 * hidden_size,), hidden_size)
    w_attn_in = unif(next(kit), (hidden_size, hidden_size), hidden_size)
    w_attn_out = unif(next(kit), (hidden_size, 2 * hidden_size), 2 * hidden_size)
    w_dec = unif(next(kit), (output_action_size, hidden_size), hidden_size)
    b_dec = unif(next(kit), (output_action_size,), hidden_size)

    actions = jax.random.randint(next(kit), (T, B, 1), 0, input_action_size)
    features = jax.random.normal(next(kit), (T, B, feature_size), jnp.float32)
    h_0 = jax.random.normal(next(kit), (B, hidden_size), jnp.float32)
    c_0 = jax.random.normal(next(kit), (B, hidden_size), jnp.float32)
    ctx = jax.random.normal(next(kit), (B, seq_len, hidden_size), jnp.float32)
    lengths = jnp.array([3, 6], jnp.int32)
    ctx_mask = jnp.arange(seq_len)[None, :] >= lengths[:, None]   # (B, S) True == masked

    params = make_params(emb_table, w_ih, w_hh, b_ih, b_hh,
                         w_attn_in, w_attn_out, w_dec, b_dec)
    raw_w = (emb_table, w_ih, w_hh, b_ih, b_hh, w_attn_in, w_attn_out, w_dec, b_dec)

    # Tolerance accounts for bf16 matmul operands + approx reciprocal (f32 reference),
    # compounded over T carried steps.
    tol = dict(rtol=5e-2, atol=5e-2)

    # (1) Fused multi-step rollout (unmasked): weights resident, h/c carried in VMEM scratch.
    rollout = jax.jit(attn_decoder_rollout)
    h_seq, c_seq, a_seq, l_seq = rollout(params, actions, features, h_0, c_0, ctx)
    jax.block_until_ready((h_seq, c_seq, a_seq, l_seq))
    refs = _reference_rollout(raw_w, actions, features, h_0, c_0, ctx, None)
    for got, want in zip((h_seq, c_seq, a_seq, l_seq), refs):
        np.testing.assert_allclose(np.asarray(got), np.asarray(want), **tol)

    # (2) Single step with ctx_mask (original AttnDecoderLSTM.forward semantics).
    step = jax.jit(attn_decoder_step)
    h_1, c_1, alpha, logit = step(params, actions[0], features[0], h_0, c_0, ctx, ctx_mask)
    jax.block_until_ready((h_1, c_1, alpha, logit))
    refs1 = _reference_step(raw_w, actions[0], features[0], h_0, c_0, ctx, ctx_mask)
    for got, want in zip((h_1, c_1, alpha, logit), refs1):
        np.testing.assert_allclose(np.asarray(got), np.asarray(want), **tol)

    print("KERNEL_OK")
</pallas_src>

<mosaic_0001>
module attributes {stable_mosaic.version = 11 : i64} {
  func.func @_attn_decoder_kernel(%arg0: i32, %arg1: memref<1x8x384xbf16, #tpu.memory_space<vmem>>, %arg2: memref<8x128xf32, #tpu.memory_space<vmem>>, %arg3: memref<8x128xf32, #tpu.memory_space<vmem>>, %arg4: memref<8x8x128xf32, #tpu.memory_space<vmem>>, %arg5: memref<8x8xf32, #tpu.memory_space<vmem>>, %arg6: memref<384x512xbf16, #tpu.memory_space<vmem>>, %arg7: memref<128x512xbf16, #tpu.memory_space<vmem>>, %arg8: memref<1x512xf32, #tpu.memory_space<vmem>>, %arg9: memref<128x256xbf16, #tpu.memory_space<vmem>>, %arg10: memref<128x128xbf16, #tpu.memory_space<vmem>>, %arg11: memref<128x8xbf16, #tpu.memory_space<vmem>>, %arg12: memref<1x8xf32, #tpu.memory_space<vmem>>, %arg13: memref<1x8x384xf32, #tpu.memory_space<vmem>>, %arg14: memref<8x128xf32, #tpu.memory_space<vmem>>, %arg15: memref<8x128xf32, #tpu.memory_space<vmem>>) attributes {dimension_semantics = [#tpu.dimension_semantics<arbitrary>], iteration_bounds = array<i64: 4>, scalar_prefetch = 0 : i64, scratch_operands = 2 : i64, tpu.core_type = #tpu.core_type<tc>, window_params = [{transform_indices = @transform_0, window_bounds = array<i64: 1, 8, 384>}, {pipeline_mode = #tpu.pipeline_mode<synchronous>, transform_indices = @transform_1, window_bounds = array<i64: 8, 128>}, {pipeline_mode = #tpu.pipeline_mode<synchronous>, transform_indices = @transform_2, window_bounds = array<i64: 8, 128>}, {pipeline_mode = #tpu.pipeline_mode<synchronous>, transform_indices = @transform_3, window_bounds = array<i64: 8, 8, 128>}, {pipeline_mode = #tpu.pipeline_mode<synchronous>, transform_indices = @transform_4, window_bounds = array<i64: 8, 8>}, {pipeline_mode = #tpu.pipeline_mode<synchronous>, transform_indices = @transform_5, window_bounds = array<i64: 384, 512>}, {pipeline_mode = #tpu.pipeline_mode<synchronous>, transform_indices = @transform_6, window_bounds = array<i64: 128, 512>}, {pipeline_mode = #tpu.pipeline_mode<synchronous>, transform_indices = @transform_7, window_bounds = array<i64: 1, 512>}, {pipeline_mode = #tpu.pipeline_mode<synchronous>, transform_indices = @transform_8, window_bounds = array<i64: 128, 256>}, {pipeline_mode = #tpu.pipeline_mode<synchronous>, transform_indices = @transform_9, window_bounds = array<i64: 128, 128>}, {pipeline_mode = #tpu.pipeline_mode<synchronous>, transform_indices = @transform_10, window_bounds = array<i64: 128, 8>}, {pipeline_mode = #tpu.pipeline_mode<synchronous>, transform_indices = @transform_11, window_bounds = array<i64: 1, 8>}, {transform_indices = @transform_12, window_bounds = array<i64: 1, 8, 384>}]} {
    %c0_i32 = arith.constant 0 : i32
    %0 = arith.cmpi eq, %arg0, %c0_i32 : i32
    %1 = arith.extui %0 : i1 to i32
    %c0_i32_0 = arith.constant 0 : i32
    %2 = arith.cmpi ne, %1, %c0_i32_0 : i32
    scf.if %2 {
      %c0_51 = arith.constant 0 : index
      %c0_52 = arith.constant 0 : index
      %91 = vector.load %arg2[%c0_51, %c0_52] : memref<8x128xf32, #tpu.memory_space<vmem>>, vector<8x128xf32>
      %c0_53 = arith.constant 0 : index
      %c0_54 = arith.constant 0 : index
      %92 = vector.load %arg14[%c0_53, %c0_54] : memref<8x128xf32, #tpu.memory_space<vmem>>, vector<8x128xf32>
      tpu.vector_store %arg14[%c0_53, %c0_54], %91 {strides = array<i32>} : memref<8x128xf32, #tpu.memory_space<vmem>>, vector<8x128xf32>,
      %c0_55 = arith.constant 0 : index
      %c0_56 = arith.constant 0 : index
      %93 = vector.load %arg3[%c0_55, %c0_56] : memref<8x128xf32, #tpu.memory_space<vmem>>, vector<8x128xf32>
      %c0_57 = arith.constant 0 : index
      %c0_58 = arith.constant 0 : index
      %94 = vector.load %arg15[%c0_57, %c0_58] : memref<8x128xf32, #tpu.memory_space<vmem>>, vector<8x128xf32>
      tpu.vector_store %arg15[%c0_57, %c0_58], %93 {strides = array<i32>} : memref<8x128xf32, #tpu.memory_space<vmem>>, vector<8x128xf32>,
    } else {
    }
    %c0 = arith.constant 0 : index
    %c0_1 = arith.constant 0 : index
    %3 = vector.load %arg14[%c0, %c0_1] : memref<8x128xf32, #tpu.memory_space<vmem>>, vector<8x128xf32>
    %c0_2 = arith.constant 0 : index
    %c0_3 = arith.constant 0 : index
    %4 = vector.load %arg15[%c0_2, %c0_3] : memref<8x128xf32, #tpu.memory_space<vmem>>, vector<8x128xf32>
    %c0_4 = arith.constant 0 : index
    %c0_5 = arith.constant 0 : index
    %c0_6 = arith.constant 0 : index
    %5 = vector.load %arg1[%c0_4, %c0_5, %c0_6] : memref<1x8x384xbf16, #tpu.memory_space<vmem>>, vector<1x8x384xbf16>
    %6 = vector.shape_cast %5 : vector<1x8x384xbf16> to vector<8x384xbf16>
    %c0_7 = arith.constant 0 : index
    %c0_8 = arith.constant 0 : index
    %7 = vector.load %arg6[%c0_7, %c0_8] : memref<384x512xbf16, #tpu.memory_space<vmem>>, vector<384x512xbf16>
    %cst = arith.constant dense<0.000000e+00> : vector<8x512xf32>
    %8 = tpu.matmul %6, %7, %cst {dimension_numbers = #tpu.dot_dimension_numbers<[1], [0], [0], [1], [0, 0, 1, 1], [], []>} : vector<8x384xbf16>, vector<384x512xbf16>, vector<8x512xf32> -> vector<8x512xf32>
    %9 = arith.truncf %3 : vector<8x128xf32> to vector<8x128xbf16>
    %c0_9 = arith.constant 0 : index
    %c0_10 = arith.constant 0 : index
    %10 = vector.load %arg7[%c0_9, %c0_10] : memref<128x512xbf16, #tpu.memory_space<vmem>>, vector<128x512xbf16>
    %cst_11 = arith.constant dense<0.000000e+00> : vector<8x512xf32>
    %11 = tpu.matmul %9, %10, %cst_11 {dimension_numbers = #tpu.dot_dimension_numbers<[1], [0], [0], [1], [0, 0, 1, 1], [], []>} : vector<8x128xbf16>, vector<128x512xbf16>, vector<8x512xf32> -> vector<8x512xf32>
    %12 = arith.addf %8, %11 : vector<8x512xf32>
    %c0_12 = arith.constant 0 : index
    %c0_13 = arith.constant 0 : index
    %13 = vector.load %arg8[%c0_12, %c0_13] : memref<1x512xf32, #tpu.memory_space<vmem>>, vector<1x512xf32>
    %14 = vector.broadcast %13 : vector<1x512xf32> to vector<8x512xf32>
    %15 = arith.addf %12, %14 : vector<8x512xf32>
    %16 = vector.extract_strided_slice %15 {offsets = [0, 0], sizes = [8, 128], strides = [1, 1]} : vector<8x512xf32> to vector<8x128xf32>
    %cst_14 = arith.constant 5.000000e-01 : f32
    %17 = vector.broadcast %cst_14 : f32 to vector<8x128xf32>
    %18 = arith.mulf %17, %16 : vector<8x128xf32>
    %19 = math.tanh %18 : vector<8x128xf32>
    %cst_15 = arith.constant 1.000000e+00 : f32
    %20 = vector.broadcast %cst_15 : f32 to vector<8x128xf32>
    %21 = arith.addf %19, %20 : vector<8x128xf32>
    %cst_16 = arith.constant 5.000000e-01 : f32
    %22 = vector.broadcast %cst_16 : f32 to vector<8x128xf32>
    %23 = arith.mulf %22, %21 : vector<8x128xf32>
    %24 = vector.extract_strided_slice %15 {offsets = [0, 128], sizes = [8, 128], strides = [1, 1]} : vector<8x512xf32> to vector<8x128xf32>
    %cst_17 = arith.constant 5.000000e-01 : f32
    %25 = vector.broadcast %cst_17 : f32 to vector<8x128xf32>
    %26 = arith.mulf %25, %24 : vector<8x128xf32>
    %27 = math.tanh %26 : vector<8x128xf32>
    %cst_18 = arith.constant 1.000000e+00 : f32
    %28 = vector.broadcast %cst_18 : f32 to vector<8x128xf32>
    %29 = arith.addf %27, %28 : vector<8x128xf32>
    %cst_19 = arith.constant 5.000000e-01 : f32
    %30 = vector.broadcast %cst_19 : f32 to vector<8x128xf32>
    %31 = arith.mulf %30, %29 : vector<8x128xf32>
    %32 = vector.extract_strided_slice %15 {offsets = [0, 256], sizes = [8, 128], strides = [1, 1]} : vector<8x512xf32> to vector<8x128xf32>
    %33 = math.tanh %32 : vector<8x128xf32>
    %34 = vector.extract_strided_slice %15 {offsets = [0, 384], sizes = [8, 128], strides = [1, 1]} : vector<8x512xf32> to vector<8x128xf32>
    %cst_20 = arith.constant 5.000000e-01 : f32
    %35 = vector.broadcast %cst_20 : f32 to vector<8x128xf32>
    %36 = arith.mulf %35, %34 : vector<8x128xf32>
    %37 = math.tanh %36 : vector<8x128xf32>
    %cst_21 = arith.constant 1.000000e+00 : f32
    %38 = vector.broadcast %cst_21 : f32 to vector<8x128xf32>
    %39 = arith.addf %37, %38 : vector<8x128xf32>
    %cst_22 = arith.constant 5.000000e-01 : f32
    %40 = vector.broadcast %cst_22 : f32 to vector<8x128xf32>
    %41 = arith.mulf %40, %39 : vector<8x128xf32>
    %42 = arith.mulf %31, %4 : vector<8x128xf32>
    %43 = arith.mulf %23, %33 : vector<8x128xf32>
    %44 = arith.addf %42, %43 : vector<8x128xf32>
    %45 = math.tanh %44 : vector<8x128xf32>
    %46 = arith.mulf %41, %45 : vector<8x128xf32>
    %47 = arith.truncf %46 : vector<8x128xf32> to vector<8x128xbf16>
    %c0_23 = arith.constant 0 : index
    %c0_24 = arith.constant 0 : index
    %48 = vector.load %arg9[%c0_23, %c0_24] : memref<128x256xbf16, #tpu.memory_space<vmem>>, vector<128x256xbf16>
    %cst_25 = arith.constant dense<0.000000e+00> : vector<8x256xf32>
    %49 = tpu.matmul %47, %48, %cst_25 {dimension_numbers = #tpu.dot_dimension_numbers<[1], [0], [0], [1], [0, 0, 1, 1], [], []>} : vector<8x128xbf16>, vector<128x256xbf16>, vector<8x256xf32> -> vector<8x256xf32>
    %50 = vector.extract_strided_slice %49 {offsets = [0, 0], sizes = [8, 128], strides = [1, 1]} : vector<8x256xf32> to vector<8x128xf32>
    %51 = vector.extract_strided_slice %49 {offsets = [0, 128], sizes = [8, 128], strides = [1, 1]} : vector<8x256xf32> to vector<8x128xf32>
    %c0_26 = arith.constant 0 : index
    %c0_27 = arith.constant 0 : index
    %c0_28 = arith.constant 0 : index
    %52 = vector.load %arg4[%c0_26, %c0_27, %c0_28] : memref<8x8x128xf32, #tpu.memory_space<vmem>>, vector<8x8x128xf32>
    %53 = vector.shape_cast %50 : vector<8x128xf32> to vector<8x1x128xf32>
    %54 = vector.broadcast %53 : vector<8x1x128xf32> to vector<8x8x128xf32>
    %55 = arith.mulf %52, %54 : vector<8x8x128xf32>
    %cst_29 = arith.constant dense<0.000000e+00> : vector<8x8xf32>
    %56 = vector.multi_reduction <add>, %55, %cst_29 [2] : vector<8x8x128xf32> to vector<8x8xf32>
    %c0_30 = arith.constant 0 : index
    %c0_31 = arith.constant 0 : index
    %57 = vector.load %arg5[%c0_30, %c0_31] : memref<8x8xf32, #tpu.memory_space<vmem>>, vector<8x8xf32>
    %58 = arith.addf %56, %57 : vector<8x8xf32>
    %cst_32 = arith.constant dense<0xFF800000> : vector<8xf32>
    %59 = vector.multi_reduction <maximumf>, %58, %cst_32 [1] : vector<8x8xf32> to vector<8xf32>
    %60 = vector.shape_cast %59 : vector<8xf32> to vector<8x1xf32>
    %61 = vector.broadcast %60 : vector<8x1xf32> to vector<8x8xf32>
    %62 = arith.subf %58, %61 : vector<8x8xf32>
    %63 = math.exp %62 : vector<8x8xf32>
    %cst_33 = arith.constant dense<0.000000e+00> : vector<8xf32>
    %64 = vector.multi_reduction <add>, %63, %cst_33 [1] : vector<8x8xf32> to vector<8xf32>
    %65 = vector.shape_cast %64 : vector<8xf32> to vector<8x1xf32>
    %66 = tpu.reciprocal %65 {approx = true} : vector<8x1xf32> -> vector<8x1xf32>
    %67 = vector.broadcast %66 : vector<8x1xf32> to vector<8x8xf32>
    %68 = arith.mulf %63, %67 : vector<8x8xf32>
    %69 = vector.shape_cast %68 : vector<8x8xf32> to vector<8x8x1xf32>
    %70 = vector.broadcast %69 : vector<8x8x1xf32> to vector<8x8x128xf32>
    %71 = arith.mulf %70, %52 : vector<8x8x128xf32>
    %cst_34 = arith.constant dense<0.000000e+00> : vector<8x128xf32>
    %72 = vector.multi_reduction <add>, %71, %cst_34 [1] : vector<8x8x128xf32> to vector<8x128xf32>
    %73 = arith.truncf %72 : vector<8x128xf32> to vector<8x128xbf16>
    %c0_35 = arith.constant 0 : index
    %c0_36 = arith.constant 0 : index
    %74 = vector.load %arg10[%c0_35, %c0_36] : memref<128x128xbf16, #tpu.memory_space<vmem>>, vector<128x128xbf16>
    %cst_37 = arith.constant dense<0.000000e+00> : vector<8x128xf32>
    %75 = tpu.matmul %73, %74, %cst_37 {dimension_numbers = #tpu.dot_dimension_numbers<[1], [0], [0], [1], [0, 0, 1, 1], [], []>} : vector<8x128xbf16>, vector<128x128xbf16>, vector<8x128xf32> -> vector<8x128xf32>
    %76 = arith.addf %75, %51 : vector<8x128xf32>
    %77 = math.tanh %76 : vector<8x128xf32>
    %78 = arith.truncf %77 : vector<8x128xf32> to vector<8x128xbf16>
    %c0_38 = arith.constant 0 : index
    %c0_39 = arith.constant 0 : index
    %79 = vector.load %arg11[%c0_38, %c0_39] : memref<128x8xbf16, #tpu.memory_space<vmem>>, vector<128x8xbf16>
    %cst_40 = arith.constant dense<0.000000e+00> : vector<8x8xf32>
    %80 = tpu.matmul %78, %79, %cst_40 {dimension_numbers = #tpu.dot_dimension_numbers<[1], [0], [0], [1], [0, 0, 1, 1], [], []>} : vector<8x128xbf16>, vector<128x8xbf16>, vector<8x8xf32> -> vector<8x8xf32>
    %c0_41 = arith.constant 0 : index
    %c0_42 = arith.constant 0 : index
    %81 = vector.load %arg12[%c0_41, %c0_42] : memref<1x8xf32, #tpu.memory_space<vmem>>, vector<1x8xf32>
    %82 = vector.broadcast %81 : vector<1x8xf32> to vector<8x8xf32>
    %83 = arith.addf %80, %82 : vector<8x8xf32>
    %c0_43 = arith.constant 0 : index
    %c0_44 = arith.constant 0 : index
    %84 = vector.load %arg14[%c0_43, %c0_44] : memref<8x128xf32, #tpu.memory_space<vmem>>, vector<8x128xf32>
    tpu.vector_store %arg14[%c0_43, %c0_44], %46 {strides = array<i32>} : memref<8x128xf32, #tpu.memory_space<vmem>>, vector<8x128xf32>,
    %c0_45 = arith.constant 0 : index
    %c0_46 = arith.constant 0 : index
    %85 = vector.load %arg15[%c0_45, %c0_46] : memref<8x128xf32, #tpu.memory_space<vmem>>, vector<8x128xf32>
    tpu.vector_store %arg15[%c0_45, %c0_46], %44 {strides = array<i32>} : memref<8x128xf32, #tpu.memory_space<vmem>>, vector<8x128xf32>,
    %cst_47 = arith.constant 0.000000e+00 : f32
    %86 = vector.broadcast %cst_47 : f32 to vector<8x112xf32>
    %87 = tpu.concatenate %46, %44, %68, %83, %86 in 1 : vector<8x128xf32>, vector<8x128xf32>, vector<8x8xf32>, vector<8x8xf32>, vector<8x112xf32> -> vector<8x384xf32>
    %c0_48 = arith.constant 0 : index
    %c0_49 = arith.constant 0 : index
    %c0_50 = arith.constant 0 : index
    %88 = vector.load %arg13[%c0_48, %c0_49, %c0_50] : memref<1x8x384xf32, #tpu.memory_space<vmem>>, vector<1x8x384xf32>
    %89 = vector.shape_cast %88 : vector<1x8x384xf32> to vector<8x384xf32>
    %90 = vector.shape_cast %87 : vector<8x384xf32> to vector<1x8x384xf32>
    tpu.vector_store %arg13[%c0_48, %c0_49, %c0_50], %90 {strides = array<i32>} : memref<1x8x384xf32, #tpu.memory_space<vmem>>, vector<1x8x384xf32>,
    return
  }
  func.func @transform_0(%arg0: i32) -> (i32, i32, i32) {
    %c0_i32 = arith.constant 0 : i32
    %c0_i32_0 = arith.constant 0 : i32
    %c0_i32_1 = arith.constant 0 : i32
    return %arg0, %c0_i32, %c0_i32_0 : i32, i32, i32
  }
  func.func @transform_1(%arg0: i32) -> (i32, i32) {
    %c0_i32 = arith.constant 0 : i32
    %c0_i32_0 = arith.constant 0 : i32
    %c0_i32_1 = arith.constant 0 : i32
    return %c0_i32, %c0_i32_0 : i32, i32
  }
  func.func @transform_2(%arg0: i32) -> (i32, i32) {
    %c0_i32 = arith.constant 0 : i32
    %c0_i32_0 = arith.constant 0 : i32
    %c0_i32_1 = arith.constant 0 : i32
    return %c0_i32, %c0_i32_0 : i32, i32
  }
  func.func @transform_3(%arg0: i32) -> (i32, i32, i32) {
    %c0_i32 = arith.constant 0 : i32
    %c0_i32_0 = arith.constant 0 : i32
    %c0_i32_1 = arith.constant 0 : i32
    %c0_i32_2 = arith.constant 0 : i32
    return %c0_i32, %c0_i32_0, %c0_i32_1 : i32, i32, i32
  }
  func.func @transform_4(%arg0: i32) -> (i32, i32) {
    %c0_i32 = arith.constant 0 : i32
    %c0_i32_0 = arith.constant 0 : i32
    %c0_i32_1 = arith.constant 0 : i32
    return %c0_i32, %c0_i32_0 : i32, i32
  }
  func.func @transform_5(%arg0: i32) -> (i32, i32) {
    %c0_i32 = arith.constant 0 : i32
    %c0_i32_0 = arith.constant 0 : i32
    %c0_i32_1 = arith.constant 0 : i32
    return %c0_i32, %c0_i32_0 : i32, i32
  }
  func.func @transform_6(%arg0: i32) -> (i32, i32) {
    %c0_i32 = arith.constant 0 : i32
    %c0_i32_0 = arith.constant 0 : i32
    %c0_i32_1 = arith.constant 0 : i32
    return %c0_i32, %c0_i32_0 : i32, i32
  }
  func.func @transform_7(%arg0: i32) -> (i32, i32) {
    %c0_i32 = arith.constant 0 : i32
    %c0_i32_0 = arith.constant 0 : i32
    %c0_i32_1 = arith.constant 0 : i32
    return %c0_i32, %c0_i32_0 : i32, i32
  }
  func.func @transform_8(%arg0: i32) -> (i32, i32) {
    %c0_i32 = arith.constant 0 : i32
    %c0_i32_0 = arith.constant 0 : i32
    %c0_i32_1 = arith.constant 0 : i32
    return %c0_i32, %c0_i32_0 : i32, i32
  }
  func.func @transform_9(%arg0: i32) -> (i32, i32) {
    %c0_i32 = arith.constant 0 : i32
    %c0_i32_0 = arith.constant 0 : i32
    %c0_i32_1 = arith.constant 0 : i32
    return %c0_i32, %c0_i32_0 : i32, i32
  }
  func.func @transform_10(%arg0: i32) -> (i32, i32) {
    %c0_i32 = arith.constant 0 : i32
    %c0_i32_0 = arith.constant 0 : i32
    %c0_i32_1 = arith.constant 0 : i32
    return %c0_i32, %c0_i32_0 : i32, i32
  }
  func.func @transform_11(%arg0: i32) -> (i32, i32) {
    %c0_i32 = arith.constant 0 : i32
    %c0_i32_0 = arith.constant 0 : i32
    %c0_i32_1 = arith.constant 0 : i32
    return %c0_i32, %c0_i32_0 : i32, i32
  }
  func.func @transform_12(%arg0: i32) -> (i32, i32, i32) {
    %c0_i32 = arith.constant 0 : i32
    %c0_i32_0 = arith.constant 0 : i32
    %c0_i32_1 = arith.constant 0 : i32
    return %arg0, %c0_i32, %c0_i32_0 : i32, i32, i32
  }
}

</mosaic_0001>

<bundles_post_ra>
// kernel: attn_decoder_rollout.1
= control target key start
LH: loop header
LB: loop body
LE: loop exit
PB: predicated region body
PF: predicated region fallthrough
CT: control target
= control target key end

     0   :  { %17 = vsyncpa [#allocation5], 0  ;;  %s3858_s0 = inlined_call_operand.vmem [shape: bf16[4,8,384], index: 0, kind: input, shape index: {}]   ;;  %s3859_s1 = inlined_call_operand.vmem [shape: f32[8,128], index: 1, kind: input, shape index: {}]   ;;  %s3860_s2 = inlined_call_operand.vmem [shape: f32[8,128], index: 2, kind: input, shape index: {}]   ;;  %s3861_s3 = inlined_call_operand.vmem [shape: f32[8,8,128], index: 3, kind: input, shape index: {}]   ;;  %s3862_s4 = inlined_call_operand.vmem [shape: f32[8,8], index: 4, kind: input, shape index: {}]   ;;  %s3863_s5 = inlined_call_operand.hbm [shape: bf16[384,512], index: 5, kind: input, shape index: {}]   ;;  %s3864_s6 = inlined_call_operand.vmem [shape: bf16[128,512], index: 6, kind: input, shape index: {}]   ;;  %s3865_s7 = inlined_call_operand.vmem [shape: f32[1,512], index: 7, kind: input, shape index: {}]   ;;  %s3866_s8 = inlined_call_operand.hbm [shape: bf16[128,256], index: 8, kind: input, shape index: {}]   ;;  %s3867_s9 = inlined_call_operand.vmem [shape: bf16[128,128], index: 9, kind: input, shape index: {}]   ;;  %s3868_s10 = inlined_call_operand.vmem [shape: bf16[128,8], index: 10, kind: input, shape index: {}]   ;;  %s3869_s11 = inlined_call_operand.hbm [shape: f32[1,8], index: 11, kind: input, shape index: {}]   ;;  %s3870_s12 = inlined_call_operand.vmem [shape: f32[4,8,384], index: 12, kind: output, shape index: {}]  }
   0x1   :  { %18 = vsyncpa [#allocation7], 0  ;;  %s3358_s21 = smov 0  }
   0x2 LB: > { %s3281_s22 = smov [#allocation6]   ;;  %s3364_s24 = sadd.s32 4294967295, %s3279_s21   ;;  %s3279_s21 = sphi %s3358_s21, %s24_s21  }
   0x3   : > { %s355_s23 = sshll.u32 %s3281_s22, 4  ;;  %p2634_p0 = scmp.ge.s32.totalorder %s3279_s21, 1  ;;  %s356_s23 = int_to_ptr.vmem [resolvable:$true] %s355_s23 }
   0x4   : > { %p312_p1 = scmp.lt.s32.totalorder %s3279_s21, 5  ;;  %p2635_p2 = scmp.ne.s32.totalorder %s3364_s24, 0 }
   0x5   : > { %p2894_p3 = scmp.eq.s32.totalorder %s3364_s24, 0  ;;  %s3282_s26 = smov [#allocation4]  }
   0x6   : > { %p3370_p4 = pnand %p2634_p0, %p312_p1  ;;  %s336_s27 = sshll.u32 %s3282_s26, 4  ;;  %s3376_s27 = int_to_ptr.vmem [resolvable:$true] %s336_s27 }
   0x7   : > { %s3283_s29 = smov [#allocation8]   ;;  %s3198_s13 = scalar_lea.vmem %s356_s23, 2048 }
   0x8   : > { %p2884_p5 = pneg %p3370_p4  ;;  %s3384_s30 = sshll.u32 %s3283_s29, 4  ;;  %s376_s30 = int_to_ptr.vmem [resolvable:$true] %s3384_s30 }
   0x9   : > { %p3199_p8 = scmp.ne.s32.totalorder %s356_s23, %s3198_s13  ;;  %p3206_p11 = scmp.lt.s32.totalorder %s356_s23, %s356_s23 }
   0xa   : > { %p3380_p6 = pnand %p2894_p3, %p2884_p5  ;;  %p3207_p12 = scmp.lt.s32.totalorder %s3198_s13, %s3198_s13 }
   0xc   : > { %p3189_p7 = pneg %p3380_p6  ;;  %p3208_p13 = por %p3207_p12, %p3206_p11 }
   0xe   : > { %p3201_p9 = pnand %p3199_p8, %p3189_p7 }
  0x10   : > { %p3202_p10 = pneg %p3201_p9 }
  0x12   : > { %p3209_p0 = pnand %p3208_p13, %p3202_p10 }
  0x14   : > { %3212 = shalt.err (!%p3209_p0)
}
  0x15   : > { %s3284_s14 = smov 128   ;;  %s3285_s15 = smov 8  }
  0x16   : > { %2890 = dma.hbm_to_vmem [thread:$0]  (!%p3380_p6), %s3866_s8, 2048, %s356_s23, [#allocation7], %s3284_s14, %s3284_s14, %s3285_s15  }
  0x17   : > { %s3224_s18 = scalar_lea.vmem %s3376_s27, 12288  ;;  %p3232_p9 = scmp.lt.s32.totalorder %s3376_s27, %s3376_s27 }
  0x18   : > { %p3225_p1 = scmp.ne.s32.totalorder %s3376_s27, %s3224_s18  ;;  %p3233_p10 = scmp.lt.s32.totalorder %s3224_s18, %s3224_s18 }
  0x1a   : > { %p3227_p5 = pnand %p3225_p1, %p3189_p7  ;;  %p3234_p11 = por %p3233_p10, %p3232_p9 }
  0x1c   : > { %p3228_p8 = pneg %p3227_p5 }
  0x1e   : > { %p3235_p12 = pnand %p3234_p11, %p3228_p8 }
  0x20   : > { %3238 = shalt.err (!%p3235_p12)
}
  0x21   : > { %s3286_s19 = smov 256   ;;  %s3287_s20 = smov 16  }
  0x22   : > { %2887 = dma.hbm_to_vmem [thread:$0]  (!%p3380_p6), %s3863_s5, 12288, %s3376_s27, [#allocation5], %s3286_s19, %s3286_s19, %s3287_s20  }
  0x23   : > { %s3250_s26 = scalar_lea.vmem %s376_s30, 16  ;;  %s3257_s29 = scalar_lea.vmem %s376_s30, 32 }
  0x24   : > { %p3251_p13 = scmp.ne.s32.totalorder %s376_s30, %s3250_s26  ;;  %p3258_p5 = scmp.lt.s32.totalorder %s376_s30, %s376_s30 }
  0x25   : > { %p3259_p8 = scmp.lt.s32.totalorder %s3257_s29, %s3250_s26 }
  0x26   : > { %p3253_p0 = pnand %p3251_p13, %p3189_p7 }
  0x27   : > { %p3260_p9 = por %p3259_p8, %p3258_p5 }
  0x28   : > { %p3254_p1 = pneg %p3253_p0 }
  0x2a   : > { %p3261_p10 = pnand %p3260_p9, %p3254_p1 }
  0x2c   : > { %3264 = shalt.err (!%p3261_p10)
}
  0x2d   : > { %2893 = dma.hbm_to_vmem [thread:$0]  (!%p3380_p6), %s3869_s11, 16, %s376_s30, [#allocation7]  }
  0x2e   : > { %396 = sbr.rel (%p3370_p4) target bundleno = 2081 (0x821), region = 68 }
  0x33   : > { %3270 = dma.done.wait (%p2894_p3), [#allocation5], 12288  }
  0x34   : > { %3272 = vsyncadd (%p2894_p3), [#allocation5], 4294955008 }
  0x35   : > { %3274 = dma.done.wait (%p2894_p3), [#allocation7], 2064  }
  0x36   : > { %3276 = vsyncadd (%p2894_p3), [#allocation7], 4294965232  ;;  %p446_p7 = scmp.lt.s32.totalorder %s3364_s24, 3 }
  0x38   : > { %s447_s27 = scalar_select %p446_p7, %s3364_s24, 3 }
  0x39   : > { %460 = sbr.rel (%p2635_p2) target bundleno = 65 (0x41), region = 84 }
  0x3a   : > { %s2870_s28 = smul.u32 12, %s447_s27 }
  0x3b   : > { %s2871_s30 = smul.u32 24, %s447_s27 }
  0x3c   : > { %s3433_s16 = scalar_lea.vmem %s3858_s0, %s2870_s28 }
  0x3d   : > { %s3438_s19 = scalar_lea.vmem %s3870_s12, %s2871_s30 }
  0x3e   : > { %v461_v0 = vld [vmem:[%s3859_s1] sm:$0xff] }
  0x3f   : > { %v463_v1 = vld [vmem:[%s3860_s2] sm:$0xff]  ;;  %462 = vst [vmem:[#allocation2] sm:$0xff] %v461_v0 }
  0x40   : > { %464 = vst [vmem:[#allocation3] sm:$0xff] %v463_v1 }
  0x41 PF: > { %v2922_v2 = vld [vmem:[%s3864_s6 + $0xe4] ss:$16 sps:$4 sm:$0xff]   ;;  %v2924_v3 = vld [vmem:[%s3864_s6 + $0xec] ss:$16 sps:$4 sm:$0xff]   ;;  %v3288_v4 = vmov 0   ;;  %vm1939_vm0 = vcmask 1041409  }
  0x42   : > { %790 = vmatprep.mubr.bf16.mxu0 %v3288_v4  ;;  %831 = vmatprep.mubr.bf16.mxu1 %v3288_v4  ;;  %v2926_v5 = vld [vmem:[%s3864_s6 + $0xe0] ss:$16 sps:$4 sm:$0xff]   ;;  %v2927_v6 = vld [vmem:[%s3864_s6 + $0xe8] ss:$16 sps:$4 sm:$0xff]   ;;  %v2928_v7 = vld [vmem:[%s3864_s6 + $0xc4] ss:$16 sps:$4 sm:$0xff]  }
  0x43   : > { %758 = vmatprep.subr.bf16.mxu0 %v2922_v2  ;;  %2920 = vset.pattern.permute.xlu0 %v3288_v4  ;;  %v2930_v8 = vld [vmem:[%s3864_s6 + $0xcc] ss:$16 sps:$4 sm:$0xff]   ;;  %v2932_v9 = vld [vmem:[%s3864_s6 + $0xc0] ss:$16 sps:$4 sm:$0xff]   ;;  %v2933_v10 = vld [vmem:[%s3864_s6 + $0xc8] ss:$16 sps:$4 sm:$0xff]  }
  0x44   : > { %799 = vmatprep.subr.bf16.mxu1 %v2924_v3  ;;  %2921 = vset.pattern.permute.xlu1 %v3288_v4  ;;  %v2934_v11 = vld [vmem:[%s3864_s6 + $0xa4] ss:$16 sps:$4 sm:$0xff]   ;;  %v2936_v12 = vld [vmem:[%s3864_s6 + $0xac] ss:$16 sps:$4 sm:$0xff]   ;;  %v2938_v13 = vld [vmem:[%s3864_s6 + $0xa0] ss:$16 sps:$4 sm:$0xff]  }
  0x45   : > { %759 = vmatpush1.bf16.msra.mxu0 %v2926_v5  ;;  %800 = vmatpush1.bf16.msra.mxu1 %v2927_v6  ;;  %v2939_v14 = vld [vmem:[%s3864_s6 + $0xa8] ss:$16 sps:$4 sm:$0xff]   ;;  %v2940_v15 = vld [vmem:[%s3864_s6 + $0x84] ss:$16 sps:$4 sm:$0xff]   ;;  %v2942_v16 = vld [vmem:[%s3864_s6 + $0x8c] ss:$16 sps:$4 sm:$0xff]  }
  0x46   : > { %760 = vmatprep.subr.bf16.mxu0 %v2928_v7  ;;  %801 = vmatprep.subr.bf16.mxu1 %v2930_v8  ;;  %v2944_v17 = vld [vmem:[%s3864_s6 + $0x80] ss:$16 sps:$4 sm:$0xff]   ;;  %v2945_v18 = vld [vmem:[%s3864_s6 + $0x88] ss:$16 sps:$4 sm:$0xff]   ;;  %v2946_v19 = vld [vmem:[%s3864_s6 + $0x64] ss:$16 sps:$4 sm:$0xff]  }
  0x47   : > { %v2948_v20 = vld [vmem:[%s3864_s6 + $0x6c] ss:$16 sps:$4 sm:$0xff]   ;;  %v2950_v21 = vld [vmem:[%s3864_s6 + $0x60] ss:$16 sps:$4 sm:$0xff]   ;;  %v2951_v22 = vld [vmem:[%s3864_s6 + $0x68] ss:$16 sps:$4 sm:$0xff]  }
  0x48   : > { %v2952_v23 = vld [vmem:[%s3864_s6 + $0x44] ss:$16 sps:$4 sm:$0xff]   ;;  %v2954_v24 = vld [vmem:[%s3864_s6 + $0x4c] ss:$16 sps:$4 sm:$0xff]   ;;  %v2956_v25 = vld [vmem:[%s3864_s6 + $0x40] ss:$16 sps:$4 sm:$0xff]  }
  0x49   : > { %761 = vmatpush1.bf16.msra.mxu0 %v2932_v9  ;;  %802 = vmatpush1.bf16.msra.mxu1 %v2933_v10  ;;  %v2957_v26 = vld [vmem:[%s3864_s6 + $0x48] ss:$16 sps:$4 sm:$0xff]   ;;  %v2958_v27 = vld [vmem:[%s3864_s6 + $0x24] ss:$16 sps:$4 sm:$0xff]   ;;  %v2960_v28 = vld [vmem:[%s3864_s6 + $0x2c] ss:$16 sps:$4 sm:$0xff]  }
  0x4a   : > { %762 = vmatprep.subr.bf16.mxu0 %v2934_v11  ;;  %803 = vmatprep.subr.bf16.mxu1 %v2936_v12  ;;  %v2962_v29 = vld [vmem:[%s3864_s6 + $0x20] ss:$16 sps:$4 sm:$0xff]   ;;  %v2963_v30 = vld [vmem:[%s3864_s6 + $0x28] ss:$16 sps:$4 sm:$0xff]   ;;  %v2964_v31 = vld [vmem:[%s3864_s6 + $0x4] ss:$16 sps:$4 sm:$0xff]  }
  0x4b   : > { %v2966_v32 = vld [vmem:[%s3864_s6 + $0xc] ss:$16 sps:$4 sm:$0xff]   ;;  %v2968_v33 = vld [vmem:[%s3864_s6] ss:$16 sps:$4 sm:$0xff]   ;;  %v2969_v34 = vld [vmem:[%s3864_s6 + $0x8] ss:$16 sps:$4 sm:$0xff]  }
  0x4c   : > { %v465_v35 = vld [vmem:[#allocation2] sm:$0xff]  ;;  %v3024_v7 = vld [vmem:[#allocation4 + $0xec] ss:$16 sps:$4 sm:$0xff]   ;;  %v3550_v9 = vld [vmem:[%s3433_s16 + $0x8] ss:$0 sps:$4 sm:$0xff]   ;;  %vm1941_vm1 = vcmask 1042434  }
  0x4d   : > { %763 = vmatpush1.bf16.msra.mxu0 %v2938_v13  ;;  %804 = vmatpush1.bf16.msra.mxu1 %v2939_v14  ;;  %v2972_v36 = vld [vmem:[#allocation4 + $0xe4] ss:$16 sps:$4 sm:$0xff]   ;;  %v565_v38 = vpack.c.bf16 %v465_v35, %v465_v35  ;;  %v2970_v39 = vld [vmem:[#allocation4 + $0xe0] ss:$16 sps:$4 sm:$0xff]   ;;  %v3022_v10 = vld [vmem:[#allocation4 + $0xe8] ss:$16 sps:$4 sm:$0xff]  }
  0x4e   : > { %764 = vmatprep.subr.bf16.mxu0 %v2940_v15  ;;  %805 = vmatprep.subr.bf16.mxu1 %v2942_v16  ;;  %v2975_v37 = vld [vmem:[#allocation4 + $0x2e4] ss:$16 sps:$4 sm:$0xff]   ;;  %v2973_v40 = vld [vmem:[#allocation4 + $0x2e0] ss:$16 sps:$4 sm:$0xff]   ;;  %v3030_v12 = vld [vmem:[#allocation4 + $0xcc] ss:$16 sps:$4 sm:$0xff]  }
  0x4f   : > { %v2978_v41 = vld [vmem:[#allocation4 + $0xc4] ss:$16 sps:$4 sm:$0xff]   ;;  %v2976_v43 = vld [vmem:[#allocation4 + $0xc0] ss:$16 sps:$4 sm:$0xff]   ;;  %v3028_v16 = vld [vmem:[#allocation4 + $0xc8] ss:$16 sps:$4 sm:$0xff]  }
  0x50   : > { %v2981_v42 = vld [vmem:[#allocation4 + $0x2c4] ss:$16 sps:$4 sm:$0xff]   ;;  %v2979_v44 = vld [vmem:[#allocation4 + $0x2c0] ss:$16 sps:$4 sm:$0xff]   ;;  %vm1943_vm2 = vcmask 1043459   ;;  %vm1945_vm3 = vcmask 1044484  }
  0x51   : > { %765 = vmatpush1.bf16.msra.mxu0 %v2944_v17  ;;  %806 = vmatpush1.bf16.msra.mxu1 %v2945_v18  ;;  %v2984_v45 = vld [vmem:[#allocation4 + $0xa4] ss:$16 sps:$4 sm:$0xff]   ;;  %v2982_v47 = vld [vmem:[#allocation4 + $0xa0] ss:$16 sps:$4 sm:$0xff]   ;;  %v3036_v18 = vld [vmem:[#allocation4 + $0xac] ss:$16 sps:$4 sm:$0xff]  }
  0x52   : > { %766 = vmatprep.subr.bf16.mxu0 %v2946_v19  ;;  %807 = vmatprep.subr.bf16.mxu1 %v2948_v20  ;;  %v2987_v46 = vld [vmem:[#allocation4 + $0x2a4] ss:$16 sps:$4 sm:$0xff]   ;;  %v2985_v48 = vld [vmem:[#allocation4 + $0x2a0] ss:$16 sps:$4 sm:$0xff]   ;;  %v3034_v20 = vld [vmem:[#allocation4 + $0xa8] ss:$16 sps:$4 sm:$0xff]  }
  0x53   : > { %v2990_v49 = vld [vmem:[#allocation4 + $0x84] ss:$16 sps:$4 sm:$0xff]   ;;  %v2988_v51 = vld [vmem:[#allocation4 + $0x80] ss:$16 sps:$4 sm:$0xff]   ;;  %vm1947_vm4 = vcmask 1045509   ;;  %vm1949_vm5 = vcmask 1046534  }
  0x54   : > { %v2993_v50 = vld [vmem:[#allocation4 + $0x284] ss:$16 sps:$4 sm:$0xff]   ;;  %v2991_v52 = vld [vmem:[#allocation4 + $0x280] ss:$16 sps:$4 sm:$0xff]   ;;  %vm1951_vm6 = vcmask 1047559   ;;  %vm1954_vm7 = vcmask 64512  }
  0x55   : > { %767 = vmatpush1.bf16.msra.mxu0 %v2950_v21  ;;  %808 = vmatpush1.bf16.msra.mxu1 %v2951_v22  ;;  %v2996_v53 = vld [vmem:[#allocation4 + $0x64] ss:$16 sps:$4 sm:$0xff]   ;;  %v2994_v55 = vld [vmem:[#allocation4 + $0x60] ss:$16 sps:$4 sm:$0xff]   ;;  %v3042_v22 = vld [vmem:[#allocation4 + $0x8c] ss:$16 sps:$4 sm:$0xff]  }
  0x56   : > { %768 = vmatprep.subr.bf16.mxu0 %v2952_v23  ;;  %809 = vmatprep.subr.bf16.mxu1 %v2954_v24  ;;  %v2999_v54 = vld [vmem:[#allocation4 + $0x264] ss:$16 sps:$4 sm:$0xff]   ;;  %v2997_v56 = vld [vmem:[#allocation4 + $0x260] ss:$16 sps:$4 sm:$0xff]   ;;  %v3040_v24 = vld [vmem:[#allocation4 + $0x88] ss:$16 sps:$4 sm:$0xff]  }
  0x57   : > { %v3002_v57 = vld [vmem:[#allocation4 + $0x44] ss:$16 sps:$4 sm:$0xff]   ;;  %v3000_v59 = vld [vmem:[#allocation4 + $0x40] ss:$16 sps:$4 sm:$0xff]   ;;  %vm3291_vm8 = vmmov 0   ;;  %s3292_s25 = smov 8  }
  0x58   : > { %v3005_v58 = vld [vmem:[#allocation4 + $0x244] ss:$16 sps:$4 sm:$0xff]   ;;  %v3003_v60 = vld [vmem:[#allocation4 + $0x240] ss:$16 sps:$4 sm:$0xff]   ;;  %vm2541_vm9 = vcmask 130048  }
  0x59   : > { %769 = vmatpush1.bf16.msra.mxu0 %v2956_v25  ;;  %810 = vmatpush1.bf16.msra.mxu1 %v2957_v26  ;;  %v3008_v61 = vld [vmem:[#allocation4 + $0x24] ss:$16 sps:$4 sm:$0xff]   ;;  %v3006_v63 = vld [vmem:[#allocation4 + $0x20] ss:$16 sps:$4 sm:$0xff]   ;;  %v3048_v26 = vld [vmem:[#allocation4 + $0x6c] ss:$16 sps:$4 sm:$0xff]  }
  0x5a   : > { %770 = vmatprep.subr.bf16.mxu0 %v2958_v27  ;;  %811 = vmatprep.subr.bf16.mxu1 %v2960_v28  ;;  %v3011_v62 = vld [vmem:[#allocation4 + $0x224] ss:$16 sps:$4 sm:$0xff]   ;;  %v3009_v0 = vld [vmem:[#allocation4 + $0x220] ss:$16 sps:$4 sm:$0xff]   ;;  %v3046_v28 = vld [vmem:[#allocation4 + $0x68] ss:$16 sps:$4 sm:$0xff]  }
  0x5b   : > { %v3014_v1 = vld [vmem:[#allocation4 + $0x4] ss:$16 sps:$4 sm:$0xff]   ;;  %v3012_v3 = vld [vmem:[#allocation4] ss:$16 sps:$4 sm:$0xff]  }
  0x5c   : > { %v3017_v2 = vld [vmem:[#allocation4 + $0x204] ss:$16 sps:$4 sm:$0xff]   ;;  %v3015_v5 = vld [vmem:[#allocation4 + $0x200] ss:$16 sps:$4 sm:$0xff]  }
  0x5d   : > { %771 = vmatpush1.bf16.msra.mxu0 %v2962_v29  ;;  %812 = vmatpush1.bf16.msra.mxu1 %v2963_v30  ;;  %v3020_v6 = vld [vmem:[#allocation4 + $0x1e4] ss:$16 sps:$4 sm:$0xff]   ;;  %v3018_v8 = vld [vmem:[#allocation4 + $0x1e0] ss:$16 sps:$4 sm:$0xff]   ;;  %v3054_v30 = vld [vmem:[#allocation4 + $0x4c] ss:$16 sps:$4 sm:$0xff]  }
  0x5e   : > { %772 = vmatprep.subr.bf16.mxu0 %v2964_v31  ;;  %813 = vmatprep.subr.bf16.mxu1 %v2966_v32  ;;  %v3027_v11 = vld [vmem:[#allocation4 + $0x1c4] ss:$16 sps:$4 sm:$0xff]   ;;  %v3025_v15 = vld [vmem:[#allocation4 + $0x1c0] ss:$16 sps:$4 sm:$0xff]   ;;  %v3052_v32 = vld [vmem:[#allocation4 + $0x48] ss:$16 sps:$4 sm:$0xff]  }
  0x5f   : > { %v467_v13 = vld [vmem:[%s3433_s16] sm:$0xff] }
  0x60   : > { %v2679_v14 = vcombine.high %v467_v13, %v467_v13  ;;  %v3033_v17 = vld [vmem:[#allocation4 + $0x1a4] ss:$16 sps:$4 sm:$0xff]   ;;  %v3031_v19 = vld [vmem:[#allocation4 + $0x1a0] ss:$16 sps:$4 sm:$0xff]  }
  0x61   : > { %773 = vmatpush1.bf16.msra.mxu0 %v2968_v33  ;;  %814 = vmatpush1.bf16.msra.mxu1 %v2969_v34  ;;  %v3039_v21 = vld [vmem:[#allocation4 + $0x184] ss:$16 sps:$4 sm:$0xff]   ;;  %v3037_v23 = vld [vmem:[#allocation4 + $0x180] ss:$16 sps:$4 sm:$0xff]   ;;  %v3060_v34 = vld [vmem:[#allocation4 + $0x2c] ss:$16 sps:$4 sm:$0xff]  }
  0x62   : > { %1331 = vmatprep.subr.bf16.mxu0 %v2972_v36  ;;  %1372 = vmatprep.subr.bf16.mxu1 %v2975_v37  ;;  %v3045_v25 = vld [vmem:[#allocation4 + $0x164] ss:$16 sps:$4 sm:$0xff]   ;;  %v3043_v27 = vld [vmem:[#allocation4 + $0x160] ss:$16 sps:$4 sm:$0xff]   ;;  %v3058_v36 = vld [vmem:[#allocation4 + $0x28] ss:$16 sps:$4 sm:$0xff]  }
  0x63   : > { %v3051_v29 = vld [vmem:[#allocation4 + $0x144] ss:$16 sps:$4 sm:$0xff]   ;;  %v3049_v31 = vld [vmem:[#allocation4 + $0x140] ss:$16 sps:$4 sm:$0xff]  }
  0x64   : > { %791 = vmatmul.mubr.bf16.vlgmr.msra.gmra.mxu0 %v565_v38  ;;  %832 = vmatmul.mubr.bf16.vlgmr.msra.gmra.mxu1 %v565_v38  ;;  %v3057_v33 = vld [vmem:[#allocation4 + $0x124] ss:$16 sps:$4 sm:$0xff]   ;;  %v3055_v35 = vld [vmem:[#allocation4 + $0x120] ss:$16 sps:$4 sm:$0xff]   ;;  %v3066_v38 = vld [vmem:[#allocation4 + $0xc] ss:$16 sps:$4 sm:$0xff]  }
  0x65   : > { %1332 = vmatpush1.bf16.msra.mxu0 %v2970_v39  ;;  %1373 = vmatpush1.bf16.msra.mxu1 %v2973_v40  ;;  %v3063_v37 = vld [vmem:[#allocation4 + $0x104] ss:$16 sps:$4 sm:$0xff]   ;;  %v3061_v39 = vld [vmem:[#allocation4 + $0x100] ss:$16 sps:$4 sm:$0xff]   ;;  %v3064_v40 = vld [vmem:[#allocation4 + $0x8] ss:$16 sps:$4 sm:$0xff]  }
  0x66   : > { %1333 = vmatprep.subr.bf16.mxu0 %v2978_v41  ;;  %1374 = vmatprep.subr.bf16.mxu1 %v2981_v42  ;;  %v3071_v41 = vld [vmem:[#allocation4 + $0x1ec] ss:$16 sps:$4 sm:$0xff]  }
  0x67   : > { %1404 = vmatprep.mubr.bf16.mxu1 %v3288_v4  ;;  %1363 = vmatprep.mubr.bf16.mxu0 %v2679_v14  ;;  %v3074_v42 = vld [vmem:[#allocation4 + $0x2ec] ss:$16 sps:$4 sm:$0xff]  }
  0x69   : > { %1334 = vmatpush1.bf16.msra.mxu0 %v2976_v43  ;;  %1375 = vmatpush1.bf16.msra.mxu1 %v2979_v44  ;;  %v3069_v43 = vld [vmem:[#allocation4 + $0x1e8] ss:$16 sps:$4 sm:$0xff]  }
  0x6a   : > { %1335 = vmatprep.subr.bf16.mxu0 %v2984_v45  ;;  %1376 = vmatprep.subr.bf16.mxu1 %v2987_v46  ;;  %v3072_v44 = vld [vmem:[#allocation4 + $0x2e8] ss:$16 sps:$4 sm:$0xff]   ;;  %v3554_v45 = vcombine.low %v467_v13, %v467_v13  ;;  %v3077_v46 = vld [vmem:[#allocation4 + $0x1cc] ss:$16 sps:$4 sm:$0xff]  }
  0x6b   : > { %v3117_v13 = vld [vmem:[#allocation6 + $0x70] ss:$8 sps:$4 sm:$0xff]  }
  0x6d   : > { %1336 = vmatpush1.bf16.msra.mxu0 %v2982_v47  ;;  %1377 = vmatpush1.bf16.msra.mxu1 %v2985_v48  ;;  %v3080_v47 = vld [vmem:[#allocation4 + $0x2cc] ss:$16 sps:$4 sm:$0xff]   ;;  %v3075_v48 = vld [vmem:[#allocation4 + $0x1c8] ss:$16 sps:$4 sm:$0xff]  }
  0x6e   : > { %1337 = vmatprep.subr.bf16.mxu0 %v2990_v49  ;;  %1378 = vmatprep.subr.bf16.mxu1 %v2993_v50  ;;  %v3078_v49 = vld [vmem:[#allocation4 + $0x2c8] ss:$16 sps:$4 sm:$0xff]   ;;  %v3083_v50 = vld [vmem:[#allocation4 + $0x1ac] ss:$16 sps:$4 sm:$0xff]  }
  0x71   : > { %1338 = vmatpush1.bf16.msra.mxu0 %v2988_v51  ;;  %1379 = vmatpush1.bf16.msra.mxu1 %v2991_v52  ;;  %v3086_v51 = vld [vmem:[#allocation4 + $0x2ac] ss:$16 sps:$4 sm:$0xff]   ;;  %v3081_v52 = vld [vmem:[#allocation4 + $0x1a8] ss:$16 sps:$4 sm:$0xff]  }
  0x72   : > { %1339 = vmatprep.subr.bf16.mxu0 %v2996_v53  ;;  %1380 = vmatprep.subr.bf16.mxu1 %v2999_v54  ;;  %v3084_v53 = vld [vmem:[#allocation4 + $0x2a8] ss:$16 sps:$4 sm:$0xff]   ;;  %v3089_v54 = vld [vmem:[#allocation4 + $0x18c] ss:$16 sps:$4 sm:$0xff]  }
  0x75   : > { %1340 = vmatpush1.bf16.msra.mxu0 %v2994_v55  ;;  %1381 = vmatpush1.bf16.msra.mxu1 %v2997_v56  ;;  %v3092_v55 = vld [vmem:[#allocation4 + $0x28c] ss:$16 sps:$4 sm:$0xff]   ;;  %v3087_v56 = vld [vmem:[#allocation4 + $0x188] ss:$16 sps:$4 sm:$0xff]  }
  0x76   : > { %1341 = vmatprep.subr.bf16.mxu0 %v3002_v57  ;;  %1382 = vmatprep.subr.bf16.mxu1 %v3005_v58  ;;  %v3090_v57 = vld [vmem:[#allocation4 + $0x288] ss:$16 sps:$4 sm:$0xff]   ;;  %v3095_v58 = vld [vmem:[#allocation4 + $0x16c] ss:$16 sps:$4 sm:$0xff]  }
  0x79   : > { %1342 = vmatpush1.bf16.msra.mxu0 %v3000_v59  ;;  %1383 = vmatpush1.bf16.msra.mxu1 %v3003_v60  ;;  %v3098_v59 = vld [vmem:[#allocation4 + $0x26c] ss:$16 sps:$4 sm:$0xff]   ;;  %v3093_v60 = vld [vmem:[#allocation4 + $0x168] ss:$16 sps:$4 sm:$0xff]  }
  0x7a   : > { %1343 = vmatprep.subr.bf16.mxu0 %v3008_v61  ;;  %1384 = vmatprep.subr.bf16.mxu1 %v3011_v62  ;;  %v3096_v61 = vld [vmem:[#allocation4 + $0x268] ss:$16 sps:$4 sm:$0xff]   ;;  %v3101_v62 = vld [vmem:[#allocation4 + $0x14c] ss:$16 sps:$4 sm:$0xff]  }
  0x7d   : > { %1344 = vmatpush1.bf16.msra.mxu0 %v3006_v63  ;;  %1385 = vmatpush1.bf16.msra.mxu1 %v3009_v0  ;;  %v3104_v63 = vld [vmem:[#allocation4 + $0x24c] ss:$16 sps:$4 sm:$0xff]   ;;  %v3099_v0 = vld [vmem:[#allocation4 + $0x148] ss:$16 sps:$4 sm:$0xff]  }
  0x7e   : > { %1345 = vmatprep.subr.bf16.mxu0 %v3014_v1  ;;  %1386 = vmatprep.subr.bf16.mxu1 %v3017_v2  ;;  %v3102_v1 = vld [vmem:[#allocation4 + $0x248] ss:$16 sps:$4 sm:$0xff]   ;;  %v3107_v2 = vld [vmem:[#allocation4 + $0x12c] ss:$16 sps:$4 sm:$0xff]  }
  0x81   : > { %1346 = vmatpush1.bf16.msra.mxu0 %v3012_v3  ;;  %1387 = vmatpush1.bf16.msra.mxu1 %v3015_v5  ;;  %v3110_v3 = vld [vmem:[#allocation4 + $0x22c] ss:$16 sps:$4 sm:$0xff]   ;;  %v3105_v5 = vld [vmem:[#allocation4 + $0x128] ss:$16 sps:$4 sm:$0xff]  }
  0x82   : > { %1347 = vmatprep.subr.bf16.mxu0 %v3020_v6  ;;  %1413 = vmatprep.subr.bf16.mxu1 %v3024_v7  ;;  %v3108_v6 = vld [vmem:[#allocation4 + $0x228] ss:$16 sps:$4 sm:$0xff]   ;;  %v3113_v7 = vld [vmem:[#allocation4 + $0x10c] ss:$16 sps:$4 sm:$0xff]  }
  0x84   : > { %1405 = vmatmul.mubr.bf16.vlgmr.msra.gmra.mxu1 %v3550_v9 }
  0x85   : > { %1348 = vmatpush2.bf16.msra.mxu0 %v3018_v8  ;;  %1414 = vmatpush1.bf16.msra.mxu1 %v3022_v10  ;;  %v3116_v8 = vld [vmem:[#allocation4 + $0x20c] ss:$16 sps:$4 sm:$0xff]   ;;  %v3111_v10 = vld [vmem:[#allocation4 + $0x108] ss:$16 sps:$4 sm:$0xff]  }
  0x86   : > { %1349 = vmatprep.subr.bf16.mxu0 %v3027_v11  ;;  %1415 = vmatprep.subr.bf16.mxu1 %v3030_v12  ;;  %v3114_v11 = vld [vmem:[#allocation4 + $0x208] ss:$16 sps:$4 sm:$0xff]   ;;  %v3119_v12 = vld [vmem:[#allocation6 + $0x74] ss:$8 sps:$4 sm:$0xff]  }
  0x87   : > { %1445 = vmatprep.mubr.bf16.mxu1 %v2679_v14  ;;  %v3122_v14 = vld [vmem:[#allocation6 + $0x64] ss:$8 sps:$4 sm:$0xff]  }
  0x89   : > { %1350 = vmatpush2.bf16.msra.mxu0 %v3025_v15  ;;  %1416 = vmatpush1.bf16.msra.mxu1 %v3028_v16  ;;  %v3120_v15 = vld [vmem:[#allocation6 + $0x60] ss:$8 sps:$4 sm:$0xff]   ;;  %v3125_v16 = vld [vmem:[#allocation6 + $0x54] ss:$8 sps:$4 sm:$0xff]  }
  0x8a   : > { %1351 = vmatprep.subr.bf16.mxu0 %v3033_v17  ;;  %1417 = vmatprep.subr.bf16.mxu1 %v3036_v18  ;;  %v3123_v17 = vld [vmem:[#allocation6 + $0x50] ss:$8 sps:$4 sm:$0xff]   ;;  %v3128_v18 = vld [vmem:[#allocation6 + $0x44] ss:$8 sps:$4 sm:$0xff]  }
  0x8d   : > { %1352 = vmatpush2.bf16.msra.mxu0 %v3031_v19  ;;  %1418 = vmatpush1.bf16.msra.mxu1 %v3034_v20  ;;  %v3126_v19 = vld [vmem:[#allocation6 + $0x40] ss:$8 sps:$4 sm:$0xff]   ;;  %v3131_v20 = vld [vmem:[#allocation6 + $0x34] ss:$8 sps:$4 sm:$0xff]  }
  0x8e   : > { %1353 = vmatprep.subr.bf16.mxu0 %v3039_v21  ;;  %1419 = vmatprep.subr.bf16.mxu1 %v3042_v22  ;;  %v3132_v21 = vld [vmem:[#allocation6 + $0x20] ss:$8 sps:$4 sm:$0xff]  }
  0x91   : > { %1354 = vmatpush2.bf16.msra.mxu0 %v3037_v23  ;;  %1420 = vmatpush1.bf16.msra.mxu1 %v3040_v24  ;;  %v3137_v24 = vld [vmem:[#allocation6 + $0x14] ss:$8 sps:$4 sm:$0xff]  }
  0x92   : > { %1355 = vmatprep.subr.bf16.mxu0 %v3045_v25  ;;  %1421 = vmatprep.subr.bf16.mxu1 %v3048_v26 }
  0x95   : > { %1356 = vmatpush2.bf16.msra.mxu0 %v3043_v27  ;;  %1422 = vmatpush1.bf16.msra.mxu1 %v3046_v28  ;;  %v1497_v27 = vlaneseq  ;;  %v3135_v28 = vld [vmem:[#allocation6 + $0x10] ss:$8 sps:$4 sm:$0xff]  }
  0x96   : > { %1357 = vmatprep.subr.bf16.mxu0 %v3051_v29  ;;  %1423 = vmatprep.subr.bf16.mxu1 %v3054_v30 }
  0x99   : > { %1358 = vmatpush2.bf16.msra.mxu0 %v3049_v31  ;;  %1424 = vmatpush1.bf16.msra.mxu1 %v3052_v32  ;;  %v3140_v31 = vld [vmem:[#allocation6 + $0x4] ss:$8 sps:$4 sm:$0xff]  }
  0x9a   : > { %1359 = vmatprep.subr.bf16.mxu0 %v3057_v33  ;;  %1425 = vmatprep.subr.bf16.mxu1 %v3060_v34  ;;  %v3562_v34 = vshrl.u32 %v1497_v27, 7 }
  0x9d   : > { %1360 = vmatpush2.bf16.msra.mxu0 %v3055_v35  ;;  %1426 = vmatpush1.bf16.msra.mxu1 %v3058_v36  ;;  %v3138_v35 = vld [vmem:[#allocation6] ss:$8 sps:$4 sm:$0xff]   ;;  %v3565_v36 = vsub.s32 0, %v3562_v34 }
  0x9e   : > { %1361 = vmatprep.subr.bf16.mxu0 %v3063_v37  ;;  %1427 = vmatprep.subr.bf16.mxu1 %v3066_v38  ;;  %v3568_v37 = vsub.s32 1, %v3562_v34  ;;  %v3573_v38 = vld [vmem:[%s3862_s4] sm:$0xff] }
  0xa1   : > { %1362 = vmatpush2.bf16.msra.mxu0 %v3061_v39  ;;  %1428 = vmatpush1.bf16.msra.mxu1 %v3064_v40  ;;  %v3576_v39 = vsub.s32 4, %v3562_v34  ;;  %v3579_v40 = vsub.s32 2, %v3562_v34 }
  0xa2   : > { %1429 = vmatprep.subr.bf16.mxu1 %v3071_v41  ;;  %1454 = vmatprep.subr.bf16.mxu0 %v3074_v42  ;;  %v1811_v41 = vrot.slane %v3573_v38, %v3568_v37  ;;  %v1804_v42 = vrot.slane %v3573_v38, %v3565_v36 }
  0xa4   : > { %1364 = vmatmul.mubr.bf16.vlgmr.msra.gmra.mxu0 %v3554_v45  ;;  %1813 = vbcast.lane.b32.xlu1 %v1811_v41, 256 }
  0xa5   : > { %1430 = vmatpush2.bf16.msra.mxu1 %v3069_v43  ;;  %1455 = vmatpush1.bf16.msra.mxu0 %v3072_v44  ;;  %v1818_v43 = vrot.slane %v3573_v38, %v3579_v40  ;;  %v1832_v44 = vrot.slane %v3573_v38, %v3576_v39 }
  0xa6   : > { %1431 = vmatprep.subr.bf16.mxu1 %v3077_v46  ;;  %1456 = vmatprep.subr.bf16.mxu0 %v3080_v47  ;;  %v3595_v47 = vsub.s32 5, %v3562_v34 }
  0xa7   : > { %1486 = vmatprep.mubr.bf16.mxu0 %v3288_v4  ;;  %1806 = vbcast.lane.b32.xlu0 %v1804_v42, 256 }
  0xa8   : > { %1820 = vbcast.lane.b32.xlu1 %v1818_v43, 256 }
  0xa9   : > { %1432 = vmatpush2.bf16.msra.mxu1 %v3075_v48  ;;  %1457 = vmatpush1.bf16.msra.mxu0 %v3078_v49  ;;  %v1839_v48 = vrot.slane %v3573_v38, %v3595_v47 }
  0xaa   : > { %1433 = vmatprep.subr.bf16.mxu1 %v3083_v50  ;;  %1458 = vmatprep.subr.bf16.mxu0 %v3086_v51 }
  0xab   : > { %1834 = vbcast.lane.b32.xlu0 %v1832_v44, 256 }
  0xad   : > { %1434 = vmatpush2.bf16.msra.mxu1 %v3081_v52  ;;  %1459 = vmatpush1.bf16.msra.mxu0 %v3084_v53 }
  0xae   : > { %1435 = vmatprep.subr.bf16.mxu1 %v3089_v54  ;;  %1460 = vmatprep.subr.bf16.mxu0 %v3092_v55 }
  0xb1   : > { %1436 = vmatpush2.bf16.msra.mxu1 %v3087_v56  ;;  %1461 = vmatpush1.bf16.msra.mxu0 %v3090_v57 }
  0xb2   : > { %1437 = vmatprep.subr.bf16.mxu1 %v3095_v58  ;;  %1462 = vmatprep.subr.bf16.mxu0 %v3098_v59  ;;  %v1495_v59 = vld [vmem:[%s3865_s7] sm:$0xf] }
  0xb5   : > { %1438 = vmatpush2.bf16.msra.mxu1 %v3093_v60  ;;  %1463 = vmatpush1.bf16.msra.mxu0 %v3096_v61  ;;  %v1504_v61 = vrot.slane %v1495_v59, %v3568_v37 }
  0xb6   : > { %1439 = vmatprep.subr.bf16.mxu1 %v3101_v62  ;;  %1464 = vmatprep.subr.bf16.mxu0 %v3104_v63  ;;  %v1500_v63 = vrot.slane %v1495_v59, %v3565_v36 }
  0xb9   : > { %1440 = vmatpush2.bf16.msra.mxu1 %v3099_v0  ;;  %1465 = vmatpush1.bf16.msra.mxu0 %v3102_v1 }
  0xba   : > { %1441 = vmatprep.subr.bf16.mxu1 %v3107_v2  ;;  %1466 = vmatprep.subr.bf16.mxu0 %v3110_v3 }
  0xbd   : > { %1442 = vmatpush2.bf16.msra.mxu1 %v3105_v5  ;;  %1467 = vmatpush1.bf16.msra.mxu0 %v3108_v6 }
  0xbe   : > { %1443 = vmatprep.subr.bf16.mxu1 %v3113_v7  ;;  %1468 = vmatprep.subr.bf16.mxu0 %v3116_v8  ;;  %v1508_v8 = vrot.slane %v1495_v59, %v3579_v40 }
  0xc1   : > { %1444 = vmatpush2.bf16.msra.mxu1 %v3111_v10  ;;  %1469 = vmatpush1.bf16.msra.mxu0 %v3114_v11 }
  0xc2   : > { %1636 = vmatprep.subr.bf16.mxu0 %v3119_v12 }
  0xc4   : > { %1446 = vmatmul.mubr.bf16.vlgmr.msra.gmra.mxu1 %v3554_v45  ;;  %1487 = vmatmul.mubr.bf16.vlgmr.msra.gmra.mxu0 %v3550_v9  ;;  %v3129_v9 = vld [vmem:[#allocation6 + $0x30] ss:$8 sps:$4 sm:$0xff]   ;;  %v3590_v45 = vsub.s32 3, %v3562_v34 }
  0xc5   : > { %1668 = vmatprep.mubr.bf16.mxu0 %v3288_v4  ;;  %1637 = vmatpush1.bf16.msra.mxu0 %v3117_v13  ;;  %v3134_v4 = vld [vmem:[#allocation6 + $0x24] ss:$8 sps:$4 sm:$0xff]  }
  0xc6   : > { %1638 = vmatprep.subr.bf16.mxu0 %v3122_v14  ;;  %v1825_v46 = vrot.slane %v3573_v38, %v3590_v45 }
  0xc8   : > { %1827 = vbcast.lane.b32.xlu1 %v1825_v46, 256  ;;  %v3289_v46 = vmov 1966171168  }
  0xc9   : > { %1639 = vmatpush1.bf16.msra.mxu0 %v3120_v15 }
  0xca   : > { %1640 = vmatprep.subr.bf16.mxu0 %v3125_v16 }
  0xcc   : > { %1841 = vbcast.lane.b32.xlu1 %v1839_v48, 256  ;;  %v1688_v48 = vunpack.c.l.s4 %v3289_v46 }
  0xcd   : > { %1641 = vmatpush1.bf16.msra.mxu0 %v3123_v17 }
  0xce   : > { %1642 = vmatprep.subr.bf16.mxu0 %v3128_v18  ;;  %v1512_v18 = vrot.slane %v1495_v59, %v3590_v45  ;;  %v3614_v59 = vld [vmem:[%s3861_s3] sm:$0xff] }
  0xd1   : > { %1643 = vmatpush1.bf16.msra.mxu0 %v3126_v19 }
  0xd2   : > { %1644 = vmatprep.subr.bf16.mxu0 %v3131_v20 }
  0xd5   : > { %1645 = vmatpush1.bf16.msra.mxu0 %v3129_v9 }
  0xd6   : > { %1646 = vmatprep.subr.bf16.mxu0 %v3134_v4 }
  0xd9   : > { %1647 = vmatpush1.bf16.msra.mxu0 %v3132_v21 }
  0xda   : > { %1648 = vmatprep.subr.bf16.mxu0 %v3137_v24 }
  0xdd   : > { %1649 = vmatpush1.bf16.msra.mxu0 %v3135_v28 }
  0xde   : > { %1650 = vmatprep.subr.bf16.mxu0 %v3140_v31 }
  0xe1   : > { %1651 = vmatpush1.bf16.msra.mxu0 %v3138_v35 }
 0x124   : > { %v792_v22 = vpop.f32.mrf.mxu0  ;;  %v833_v23 = vpop.f32.mrf.mxu1 }
 0x126   : > { %v794_v25 = vpop.f32.mrf.mxu0  ;;  %v835_v26 = vpop.f32.mrf.mxu1 }
 0x128   : > { %v796_v29 = vpop.f32.mrf.mxu0  ;;  %v837_v30 = vpop.f32.mrf.mxu1 }
 0x12a   : > { %v797_v32 = vpop.f32.mrf.mxu0  ;;  %v838_v33 = vpop.f32.mrf.mxu1 }
 0x144   : > { %v1406_v49 = vpop.f32.mrf.mxu1 }
 0x146   : > { %v1408_v50 = vpop.f32.mrf.mxu1 }
 0x148   : > { %v1410_v51 = vpop.f32.mrf.mxu1 }
 0x14a   : > { %v1411_v52 = vpop.f32.mrf.mxu1 }
 0x164   : > { %v1365_v53 = vpop.f32.mrf.mxu0 }
 0x165   : > { %v1366_v58 = vadd.f32 %v1365_v53, %v792_v22 }
 0x166   : > { %v1367_v54 = vpop.f32.mrf.mxu0 }
 0x167   : > { %v1368_v57 = vadd.f32 %v1367_v54, %v794_v25  ;;  %v1407_v62 = vadd.f32 %v1406_v49, %v1366_v58  ;;  %v1689_v49 = vunpack.c.0.s8 %v1688_v48 }
 0x168   : > { %v1369_v55 = vpop.f32.mrf.mxu0 }
 0x169   : > { %v1409_v60 = vadd.f32 %v1408_v50, %v1368_v57  ;;  %v1517_v1 = vadd.f32 %v1500_v63, %v1407_v62  ;;  %v1692_v50 = vsub.s32 %v1689_v49, %v3562_v34 }
 0x16a   : > { %v1370_v56 = vpop.f32.mrf.mxu0 }
 0x16b   : > { %v1518_v0 = vadd.f32 %v1504_v61, %v1409_v60  ;;  %v1521_v3 = vmul.f32 0.5, %v1517_v1  ;;  %v3620_v1 = vld [vmem:[%s3861_s3 + $0x10] sm:$0xff] }
 0x16d   : > { %v1525_v2 = vmul.f32 0.5, %v1518_v0 }
 0x16f   : > { %3157 = vtanh.f32 %v1525_v2 }
 0x170   : > { %3159 = vtanh.f32 %v1521_v3 }
 0x17c   : > { %v3158_v4 = vpop.eup %3157 }
 0x17d   : > { %v3160_v21 = vpop.eup %3159  ;;  %v1527_v22 = vadd.f32 1.0, %v3158_v4 }
 0x17e   : > { %v1523_v24 = vadd.f32 1.0, %v3160_v21 }
 0x17f   : > { %v1528_v25 = vmul.f32 0.5, %v1527_v22  ;;  %v3656_v22 = vld [vmem:[%s3861_s3 + $0x30] sm:$0xff] }
 0x180   : > { %v1524_v28 = vmul.f32 0.5, %v1523_v24 }
 0x184   : > { %v1447_v5 = vpop.f32.mrf.mxu1  ;;  %v1488_v6 = vpop.f32.mrf.mxu0 }
 0x185   : > { %v1448_v7 = vadd.f32 %v1447_v5, %v833_v23 }
 0x186   : > { %v1449_v10 = vpop.f32.mrf.mxu1  ;;  %v1490_v11 = vpop.f32.mrf.mxu0 }
 0x187   : > { %v1489_v12 = vadd.f32 %v1488_v6, %v1448_v7  ;;  %v1450_v13 = vadd.f32 %v1449_v10, %v835_v26  ;;  %v466_v26 = vld [vmem:[#allocation3] sm:$0xff] }
 0x188   : > { %v1451_v14 = vpop.f32.mrf.mxu1  ;;  %v1492_v15 = vpop.f32.mrf.mxu0  ;;  %v1534_v30 = vmul.f32 %v1528_v25, %v466_v26  ;;  %v3663_v25 = vld [vmem:[%s3861_s3 + $0x38] sm:$0xff] }
 0x189   : > { %v1519_v16 = vadd.f32 %v1508_v8, %v1489_v12  ;;  %v1491_v17 = vadd.f32 %v1490_v11, %v1450_v13  ;;  %v3628_v8 = vld [vmem:[%s3861_s3 + $0x8] sm:$0xff]  ;;  %v3635_v13 = vld [vmem:[%s3861_s3 + $0x18] sm:$0xff] }
 0x18a   : > { %v1452_v19 = vpop.f32.mrf.mxu1  ;;  %v1493_v20 = vpop.f32.mrf.mxu0 }
 0x18b   : > { %3161 = vtanh.f32 %v1519_v16  ;;  %v1520_v9 = vadd.f32 %v1512_v18, %v1491_v17  ;;  %v3642_v17 = vld [vmem:[%s3861_s3 + $0x20] sm:$0xff] }
 0x18d   : > { %v1530_v23 = vmul.f32 0.5, %v1520_v9  ;;  %v3649_v9 = vld [vmem:[%s3861_s3 + $0x28] sm:$0xff] }
 0x18f   : > { %3163 = vtanh.f32 %v1530_v23 }
 0x198   : > { %v3162_v29 = vpop.eup %3161 }
 0x199   : > { %v1535_v31 = vmul.f32 %v3162_v29, %v1524_v28  ;;  %v3668_v29 = vsub.s32 7, %v3562_v34 }
 0x19b   : > { %v1536_v32 = vadd.f32 %v1535_v31, %v1534_v30  ;;  %v3671_v30 = vsub.s32 6, %v3562_v34  ;;  %v1853_v31 = vrot.slane %v3573_v38, %v3668_v29 }
 0x19c   : > { %v3164_v33 = vpop.eup %3163 }
 0x19d   : > { %2495 = vst [vmem:[#allocation3] sm:$0xff] %v1536_v32  ;;  %2544 = vst [vmem:[%s3438_s19 + $0x8] sm:$0xff] %v1536_v32  ;;  %3165 = vtanh.f32 %v1536_v32  ;;  %v1532_v35 = vadd.f32 1.0, %v3164_v33  ;;  %v1846_v32 = vrot.slane %v3573_v38, %v3671_v30  ;;  %v1814_v33 = vpop.permute.xlu1 %1813 }
 0x19f   : > { %v1533_v41 = vmul.f32 0.5, %v1532_v35 }
 0x1a1   : > { %v1821_v35 = vpop.permute.xlu1 %1820 }
 0x1aa   : > { %v3166_v42 = vpop.eup %3165 }
 0x1ab   : > { %v1538_v43 = vmul.f32 %v3166_v42, %v1533_v41  ;;  %v1807_v41 = vpop.permute.xlu0 %1806  ;;  %v1828_v42 = vpop.permute.xlu1 %1827 }
 0x1ad   : > { %2494 = vst [vmem:[#allocation2] sm:$0xff] %v1538_v43  ;;  %2543 = vst [vmem:[%s3438_s19] sm:$0xff] %v1538_v43  ;;  %v1539_v44 = vpack.c.bf16 %v1538_v43, %v1538_v43 }
 0x1af   : > { %1669 = vmatmul.mubr.bf16.vlgmr.msra.gmra.mxu0 %v1539_v44  ;;  %v1835_v43 = vpop.permute.xlu0 %1834  ;;  %v1842_v44 = vpop.permute.xlu1 %1841 }
 0x26f   : > { %v1670_v51 = vpop.f32.mrf.mxu0 }
 0x270   : > { %v1686_v52 = vcombine.high %v1670_v51, %v1670_v51  ;;  %v1693_v53 = vrot.slane %v1670_v51, %v1692_v50 }
 0x271   : > { %v3609_v54 = vpop.f32.mrf.mxu0 }
 0x272   : > { %v1700_v55 = vrot.slane %v1686_v52, %v1692_v50  ;;  %v1701_v56 = vcombine.high %v1693_v53, %v1693_v53  ;;  %v1709_v57 = vrot.slane %v1693_v53, %v1692_v50 }
 0x273   : > { %v1674_v58 = vpop.f32.mrf.mxu0 }
 0x274   : > { %v1702_v60 = vcombine.high %v1700_v55, %v1700_v55  ;;  %v1738_v61 = vrot.slane %v1709_v57, %v3565_v36  ;;  %v1731_v62 = vcombine.high %v1709_v57, %v1709_v57  ;;  %v1723_v63 = vrot.slane %v1701_v56, %v1692_v50 }
 0x275   : > { %v1675_v0 = vpop.f32.mrf.mxu0  ;;  %v1716_v2 = vrot.slane %v1700_v55, %v1692_v50 }
 0x276   : > { %v1775_v3 = vmul.f32 %v1738_v61, %v3614_v59  ;;  %v1746_v5 = vrot.slane %v1731_v62, %v3565_v36  ;;  %v1742_v6 = vrot.slane %v1723_v63, %v3565_v36  ;;  %v1733_v7 = vcombine.high %v1723_v63, %v1723_v63 }
 0x277   : > { %v1730_v12 = vrot.slane %v1702_v60, %v1692_v50  ;;  %v1754_v15 = vrot.slane %v1716_v2, %v3565_v36  ;;  %v1732_v16 = vcombine.high %v1716_v2, %v1716_v2 }
 0x278   : > { %1783 = vadd.xlane.f32.xlu0 %v1775_v3  ;;  %v1777_v10 = vmul.f32 %v1746_v5, %v3620_v1  ;;  %v1750_v11 = vrot.slane %v1733_v7, %v3565_v36  ;;  %v1776_v14 = vmul.f32 %v1742_v6, %v3628_v8  ;;  %v1906_v3 = vand.u32 127, %v1497_v27 }
 0x279   : > { %v1758_v19 = vrot.slane %v1730_v12, %v3565_v36  ;;  %v1734_v20 = vcombine.high %v1730_v12, %v1730_v12  ;;  %v1779_v4 = vmul.f32 %v1754_v15, %v3642_v17  ;;  %v1762_v21 = vrot.slane %v1732_v16, %v3565_v36 }
 0x27a   : > { %1787 = vadd.xlane.f32.xlu1 %v1777_v10  ;;  %v1778_v18 = vmul.f32 %v1750_v11, %v3635_v13  ;;  %v3694_v6 = vsub.s32 %v1906_v3, %v3562_v34 }
 0x27b   : > { %v1780_v23 = vmul.f32 %v1758_v19, %v3649_v9  ;;  %v1766_v24 = vrot.slane %v1734_v20, %v3565_v36  ;;  %v1781_v26 = vmul.f32 %v1762_v21, %v3656_v22 }
 0x27c   : > { %1785 = vadd.xlane.f32.xlu0 %v1776_v14 }
 0x27d   : > { %v1782_v28 = vmul.f32 %v1766_v24, %v3663_v25 }
 0x27e   : > { %1789 = vadd.xlane.f32.xlu1 %v1778_v18 }
 0x280   : > { %1791 = vadd.xlane.f32.xlu0 %v1779_v4 }
 0x282   : > { %1793 = vadd.xlane.f32.xlu1 %v1780_v23 }
 0x284   : > { %1795 = vadd.xlane.f32.xlu0 %v1781_v26 }
 0x286   : > { %1797 = vadd.xlane.f32.xlu1 %v1782_v28 }
 0x297   : > { %1855 = vbcast.lane.b32.xlu1 %v1853_v31, 256 }
 0x29a   : > { %1848 = vbcast.lane.b32.xlu0 %v1846_v32, 256 }
 0x301   : > { %v1784_v46 = vpop.xlane.xlu0 %1783 }
 0x302   : > { %v3677_v48 = vadd.f32 %v1807_v41, %v1784_v46 }
 0x303   : > { %v1788_v49 = vpop.xlane.xlu1 %1787 }
 0x304   : > { %1882 = vperm.xlu0 %2920, %v3677_v48   ;;  %v1867_v55 = vadd.f32 %v1821_v35, %v1788_v49 }
 0x305   : > { %v1786_v50 = vpop.xlane.xlu0 %1785 }
 0x306   : > { %v1866_v51 = vadd.f32 %v1814_v33, %v1786_v50 }
 0x307   : > { %v1790_v52 = vpop.xlane.xlu1 %1789 }
 0x308   : > { %v3680_v53 = vadd.f32 %v1828_v42, %v1790_v52  ;;  %1885 = vperm.xlu1 %2921, %v1866_v51  }
 0x309   : > { %v1792_v38 = vpop.xlane.xlu0 %1791 }
 0x30a   : > { %1891 = vperm.xlu0 %2920, %v3680_v53   ;;  %v1869_v60 = vadd.f32 %v1835_v43, %v1792_v38 }
 0x30b   : > { %v1794_v56 = vpop.xlane.xlu1 %1793 }
 0x30c   : > { %v3683_v57 = vadd.f32 %v1842_v44, %v1794_v56  ;;  %1888 = vperm.xlu1 %2921, %v1867_v55  }
 0x30d   : > { %v1796_v58 = vpop.xlane.xlu0 %1795 }
 0x30e   : > { %1897 = vperm.xlu0 %2920, %v3683_v57  }
 0x30f   : > { %v1798_v61 = vpop.xlane.xlu1 %1797 }
 0x310   : > { %1894 = vperm.xlu1 %2921, %v1869_v60  }
 0x311   : > { %v1849_v62 = vpop.permute.xlu0 %1848 }
 0x312   : > { %v3686_v63 = vadd.f32 %v1849_v62, %v1796_v58 }
 0x313   : > { %v1856_v0 = vpop.permute.xlu1 %1855 }
 0x314   : > { %v3688_v2 = vadd.f32 %v1856_v0, %v1798_v61  ;;  %1900 = vperm.xlu1 %2921, %v3686_v63  }
 0x316   : > { %1903 = vperm.xlu0 %2920, %v3688_v2  }
 0x37f   : > { %v1883_v5 = vpop.permute.xlu0 %1882 }
 0x380   : > { %v1910_v12 = vrot.slane %v1883_v5, %v3694_v6 }
 0x383   : > { %v1886_v7 = vpop.permute.xlu1 %1885 }
 0x384   : > { %v1914_v10 = vrot.slane %v1886_v7, %v3694_v6 }
 0x385   : > { %v1892_v11 = vpop.permute.xlu0 %1891 }
 0x386   : > { %v1940_v16 = vsel %vm1939_vm0, %v1914_v10, %v1910_v12  ;;  %v1922_v27 = vrot.slane %v1892_v11, %v3694_v6 }
 0x387   : > { %v1889_v14 = vpop.permute.xlu1 %1888 }
 0x388   : > { %v1918_v15 = vrot.slane %v1889_v14, %v3694_v6 }
 0x389   : > { %v1898_v19 = vpop.permute.xlu0 %1897 }
 0x38a   : > { %v1942_v18 = vsel %vm1941_vm1, %v1918_v15, %v1940_v16  ;;  %v1930_v23 = vrot.slane %v1898_v19, %v3694_v6 }
 0x38b   : > { %v1895_v34 = vpop.permute.xlu1 %1894  ;;  %v1944_v4 = vsel %vm1943_vm2, %v1922_v27, %v1942_v18 }
 0x38c   : > { %v1926_v20 = vrot.slane %v1895_v34, %v3694_v6 }
 0x38e   : > { %v1946_v21 = vsel %vm1945_vm3, %v1926_v20, %v1944_v4 }
 0x38f   : > { %v1901_v24 = vpop.permute.xlu1 %1900  ;;  %v1948_v31 = vsel %vm1947_vm4, %v1930_v23, %v1946_v21 }
 0x390   : > { %v1934_v26 = vrot.slane %v1901_v24, %v3694_v6 }
 0x391   : > { %v1904_v28 = vpop.permute.xlu0 %1903 }
 0x392   : > { %v1938_v32 = vrot.slane %v1904_v28, %v3694_v6  ;;  %v1950_v33 = vsel %vm1949_vm5, %v1934_v26, %v1948_v31 }
 0x394   : > { %v1952_v35 = vsel %vm1951_vm6, %v1938_v32, %v1950_v33 }
 0x395   : > { %v1955_v41 = vsel %vm1954_vm7, %v1952_v35, -inf }
 0x396   : > { %1956 = vmax.xlane.f32.xlu1 %v1955_v41 }
 0x41f   : > { %v1957_v42 = vpop.xlane.xlu1 %1956 }
 0x420   : > { %v1962_v43 = vrot.slane %v1957_v42, %v3565_v36  ;;  %v1966_v44 = vrot.slane %v1957_v42, %v3568_v37  ;;  %v1970_v46 = vrot.slane %v1957_v42, %v3579_v40  ;;  %v1974_v38 = vrot.slane %v1957_v42, %v3590_v45 }
 0x421   : > { %v1978_v61 = vrot.slane %v1957_v42, %v3576_v39  ;;  %v1982_v3 = vrot.slane %v1957_v42, %v3595_v47  ;;  %v1990_v11 = vrot.slane %v1957_v42, %v3668_v29 }
 0x422   : > { %v1999_v49 = vsub.f32 %v3677_v48, %v1962_v43  ;;  %v2000_v50 = vsub.f32 %v1866_v51, %v1966_v44  ;;  %v2001_v56 = vsub.f32 %v1867_v55, %v1970_v46  ;;  %v2002_v62 = vsub.f32 %v3680_v53, %v1974_v38 }
 0x423   : > { %v2003_v5 = vsub.f32 %v1869_v60, %v1978_v61  ;;  %v1986_v48 = vrot.slane %v1957_v42, %v3671_v30  ;;  %v2004_v51 = vsub.f32 %v3683_v57, %v1982_v3  ;;  %v2006_v60 = vsub.f32 %v3688_v2, %v1990_v11 }
 0x424   : > { %v2007_v52 = vmul.f32 1.442695, %v1999_v49  ;;  %v2009_v58 = vmul.f32 1.442695, %v2000_v50  ;;  %v2011_v0 = vmul.f32 1.442695, %v2001_v56 }
 0x425   : > { %v2013_v7 = vmul.f32 1.442695, %v2002_v62  ;;  %v2015_v10 = vmul.f32 1.442695, %v2003_v5  ;;  %v2005_v12 = vsub.f32 %v3686_v63, %v1986_v48  ;;  %v2017_v53 = vmul.f32 1.442695, %v2004_v51 }
 0x426   : > { %3167 = vpow2.f32 %v2007_v52  ;;  %v2021_v57 = vmul.f32 1.442695, %v2006_v60 }
 0x427   : > { %3169 = vpow2.f32 %v2009_v58  ;;  %v2019_v15 = vmul.f32 1.442695, %v2005_v12 }
 0x428   : > { %3171 = vpow2.f32 %v2011_v0 }
 0x429   : > { %3173 = vpow2.f32 %v2013_v7 }
 0x42a   : > { %3175 = vpow2.f32 %v2015_v10 }
 0x42b   : > { %3177 = vpow2.f32 %v2017_v53 }
 0x42c   : > { %3179 = vpow2.f32 %v2019_v15 }
 0x42d   : > { %3181 = vpow2.f32 %v2021_v57  ;;  %v3146_v57 = vld [vmem:[%s3867_s9 + $0x10] sm:$0xff]  }
 0x433   : > { %v3168_v55 = vpop.eup %3167 }
 0x434   : > { %2032 = vperm.xlu0 %2920, %v3168_v55   ;;  %v3170_v14 = vpop.eup %3169 }
 0x435   : > { %v3172_v16 = vpop.eup %3171 }
 0x436   : > { %v3174_v18 = vpop.eup %3173 }
 0x437   : > { %v3176_v27 = vpop.eup %3175 }
 0x438   : > { %2035 = vperm.xlu0 %2920, %v3170_v14   ;;  %v3178_v34 = vpop.eup %3177 }
 0x439   : > { %v3180_v63 = vpop.eup %3179 }
 0x43a   : > { %v3182_v19 = vpop.eup %3181 }
 0x43c   : > { %2038 = vperm.xlu0 %2920, %v3172_v16  }
 0x440   : > { %2041 = vperm.xlu0 %2920, %v3174_v18  }
 0x444   : > { %2044 = vperm.xlu0 %2920, %v3176_v27  }
 0x448   : > { %2047 = vperm.xlu0 %2920, %v3178_v34  }
 0x44c   : > { %2050 = vperm.xlu0 %2920, %v3180_v63  }
 0x450   : > { %2053 = vperm.xlu0 %2920, %v3182_v19  }
 0x4af   : > { %v2033_v20 = vpop.permute.xlu0 %2032 }
 0x4b0   : > { %v2058_v31 = vrot.slane %v2033_v20, %v3694_v6 }
 0x4b3   : > { %v2036_v4 = vpop.permute.xlu0 %2035 }
 0x4b4   : > { %v2062_v26 = vrot.slane %v2036_v4, %v3694_v6 }
 0x4b6   : > { %v2087_v41 = vsel %vm1939_vm0, %v2062_v26, %v2058_v31 }
 0x4b7   : > { %v2039_v2 = vpop.permute.xlu0 %2038 }
 0x4b8   : > { %v2066_v28 = vrot.slane %v2039_v2, %v3694_v6 }
 0x4ba   : > { %v2088_v43 = vsel %vm1941_vm1, %v2066_v28, %v2087_v41 }
 0x4bb   : > { %v2042_v21 = vpop.permute.xlu0 %2041 }
 0x4bc   : > { %v2070_v32 = vrot.slane %v2042_v21, %v3694_v6 }
 0x4be   : > { %v2089_v46 = vsel %vm1943_vm2, %v2070_v32, %v2088_v43 }
 0x4bf   : > { %v2045_v23 = vpop.permute.xlu0 %2044 }
 0x4c0   : > { %v2074_v33 = vrot.slane %v2045_v23, %v3694_v6 }
 0x4c2   : > { %v2090_v49 = vsel %vm1945_vm3, %v2074_v33, %v2089_v46 }
 0x4c3   : > { %v2048_v24 = vpop.permute.xlu0 %2047 }
 0x4c4   : > { %v2078_v42 = vrot.slane %v2048_v24, %v3694_v6 }
 0x4c6   : > { %v2091_v52 = vsel %vm1947_vm4, %v2078_v42, %v2090_v49 }
 0x4c7   : > { %v2051_v35 = vpop.permute.xlu0 %2050 }
 0x4c8   : > { %v2082_v44 = vrot.slane %v2051_v35, %v3694_v6 }
 0x4ca   : > { %v2092_v56 = vsel %vm1949_vm5, %v2082_v44, %v2091_v52 }
 0x4cb   : > { %v2054_v50 = vpop.permute.xlu0 %2053 }
 0x4cc   : > { %v2086_v38 = vrot.slane %v2054_v50, %v3694_v6 }
 0x4ce   : > { %v2093_v58 = vsel %vm1951_vm6, %v2086_v38, %v2092_v56 }
 0x4cf   : > { %v2095_v61 = vsel %vm1954_vm7, %v2093_v58, 0.0 }
 0x4d0   : > { %2096 = vadd.xlane.f32.xlu0 %v2095_v61 }
 0x559   : > { %v2097_v62 = vpop.xlane.xlu0 %2096 }
 0x55a   : > { %3183 = vrcp.f32 %v2097_v62 }
 0x567   : > { %v3184_v0 = vpop.eup %3183 }
 0x568   : > { %v2119_v3 = vrot.slane %v3184_v0, %v3576_v39  ;;  %v2103_v5 = vrot.slane %v3184_v0, %v3565_v36  ;;  %v2107_v51 = vrot.slane %v3184_v0, %v3568_v37  ;;  %v2111_v11 = vrot.slane %v3184_v0, %v3579_v40  ;;  %v3141_v37 = vld [vmem:[%s3867_s9 + $0x38] sm:$0xff]  }
 0x569   : > { %v2115_v53 = vrot.slane %v3184_v0, %v3590_v45  ;;  %v2123_v15 = vrot.slane %v3184_v0, %v3595_v47  ;;  %v2127_v36 = vrot.slane %v3184_v0, %v3671_v30  ;;  %v2131_v45 = vrot.slane %v3184_v0, %v3668_v29  ;;  %v3142_v47 = vld [vmem:[%s3867_s9 + $0x30] sm:$0xff]   ;;  %v3144_v29 = vld [vmem:[%s3867_s9 + $0x20] sm:$0xff]  }
 0x56a   : > { %v2144_v7 = vmul.f32 %v3176_v27, %v2119_v3  ;;  %v2140_v48 = vmul.f32 %v3168_v55, %v2103_v5  ;;  %v2141_v10 = vmul.f32 %v3170_v14, %v2107_v51  ;;  %v2142_v12 = vmul.f32 %v3172_v16, %v2111_v11  ;;  %v3143_v14 = vld [vmem:[%s3867_s9 + $0x28] sm:$0xff]   ;;  %v3145_v16 = vld [vmem:[%s3867_s9 + $0x18] sm:$0xff]   ;;  %v3148_v27 = vld [vmem:[%s3867_s9] sm:$0xff]  }
 0x56b   : > { %v2143_v60 = vmul.f32 %v3174_v18, %v2115_v53  ;;  %v2145_v39 = vmul.f32 %v3178_v34, %v2123_v15  ;;  %v3290_v55 = vmov 0.0   ;;  %v2146_v40 = vmul.f32 %v3180_v63, %v2127_v36  ;;  %v3147_v18 = vld [vmem:[%s3867_s9 + $0x8] sm:$0xff]   ;;  %v3149_v34 = vld [vmem:[%s3868_s10 + $0x38] sm:$0xff]   ;;  %v3150_v63 = vld [vmem:[%s3868_s10 + $0x30] sm:$0xff]  }
 0x56c   : > { %2170 = vperm.xlu0 %2920, %v2144_v7   ;;  %2150 = vperm.xlu1 %2921, %v2140_v48   ;;  %v2147_v30 = vmul.f32 %v3182_v19, %v2131_v45  ;;  %v3151_v19 = vld [vmem:[%s3868_s10 + $0x28] sm:$0xff]  }
 0x56d   : > { %2830 = vmatprep.subr.bf16.mxu1 %v3290_v55  ;;  %2850 = vmatprep.subr.bf16.mxu0 %v3290_v55 }
 0x56e   : > { %2831 = vmatpush3.bf16.msra.mxu1 %v3141_v37  ;;  %2846 = vmatprep.mubr.msk.bf16.mxu1 %vm3291_vm8, %v3290_v55 }
 0x56f   : > { %2832 = vmatprep.subr.bf16.mxu1 %v3290_v55  ;;  %2866 = vmatprep.mubr.msk.bf16.mxu0 %vm3291_vm8, %v3290_v55 }
 0x570   : > { %2155 = vperm.xlu1 %2921, %v2141_v10   ;;  %2851 = vmatpush3.bf16.msra.mxu0 %v3149_v34 }
 0x571   : > { %2852 = vmatprep.subr.bf16.mxu0 %v3290_v55 }
 0x572   : > { %2833 = vmatpush3.bf16.msra.mxu1 %v3142_v47 }
 0x573   : > { %2834 = vmatprep.subr.bf16.mxu1 %v3290_v55 }
 0x574   : > { %2160 = vperm.xlu1 %2921, %v2142_v12   ;;  %2853 = vmatpush3.bf16.msra.mxu0 %v3150_v63 }
 0x575   : > { %2854 = vmatprep.subr.bf16.mxu0 %v3290_v55 }
 0x576   : > { %2835 = vmatpush3.bf16.msra.mxu1 %v3143_v14 }
 0x577   : > { %2836 = vmatprep.subr.bf16.mxu1 %v3290_v55 }
 0x578   : > { %2165 = vperm.xlu1 %2921, %v2143_v60   ;;  %2855 = vmatpush3.bf16.msra.mxu0 %v3151_v19 }
 0x579   : > { %2856 = vmatprep.subr.bf16.mxu0 %v3290_v55 }
 0x57a   : > { %2837 = vmatpush3.bf16.msra.mxu1 %v3144_v29 }
 0x57b   : > { %2838 = vmatprep.subr.bf16.mxu1 %v3290_v55 }
 0x57c   : > { %2175 = vperm.xlu1 %2921, %v2145_v39  }
 0x57e   : > { %2839 = vmatpush3.bf16.msra.mxu1 %v3145_v16 }
 0x57f   : > { %2840 = vmatprep.subr.bf16.mxu1 %v3290_v55 }
 0x580   : > { %2180 = vperm.xlu1 %2921, %v2146_v40  }
 0x582   : > { %2841 = vmatpush3.bf16.msra.mxu1 %v3146_v57 }
 0x583   : > { %2842 = vmatprep.subr.bf16.mxu1 %v3290_v55 }
 0x584   : > { %2185 = vperm.xlu1 %2921, %v2147_v30  }
 0x586   : > { %2843 = vmatpush3.bf16.msra.mxu1 %v3147_v18 }
 0x587   : > { %2844 = vmatprep.subr.bf16.mxu1 %v3290_v55 }
 0x58a   : > { %2845 = vmatpush3.bf16.msra.mxu1 %v3148_v27 }
 0x5e7   : > { %v2151_v20 = vpop.permute.xlu1 %2150  ;;  %v2171_v2 = vpop.permute.xlu0 %2170 }
 0x5e8   : > { %v2188_v4 = vmul.f32 %v2151_v20, %v3614_v59  ;;  %v2192_v24 = vmul.f32 %v2171_v2, %v3642_v17  ;;  %v2499_v26 = vrot.slane %v2151_v20, %v3694_v6  ;;  %v2515_v3 = vrot.slane %v2171_v2, %v3694_v6 }
 0x5ea   : > { %v2196_v21 = vrot.slane %v2188_v4, 4  ;;  %v2220_v42 = vrot.slane %v2192_v24, 4 }
 0x5eb   : > { %v2156_v23 = vpop.permute.xlu1 %2155 }
 0x5ec   : > { %v2189_v28 = vmul.f32 %v2156_v23, %v3628_v8  ;;  %v2503_v31 = vrot.slane %v2156_v23, %v3694_v6  ;;  %v2197_v32 = vadd.f32 %v2196_v21, %v2188_v4  ;;  %v2221_v8 = vadd.f32 %v2220_v42, %v2192_v24 }
 0x5ee   : > { %v2202_v33 = vrot.slane %v2189_v28, 4  ;;  %v2528_v35 = vsel %vm1939_vm0, %v2503_v31, %v2499_v26  ;;  %v2198_v46 = vrot.slane %v2197_v32, 2  ;;  %v2222_v48 = vrot.slane %v2221_v8, 2 }
 0x5ef   : > { %v2161_v41 = vpop.permute.xlu1 %2160 }
 0x5f0   : > { %v2203_v43 = vadd.f32 %v2202_v33, %v2189_v28  ;;  %v2190_v59 = vmul.f32 %v2161_v41, %v3620_v1  ;;  %v2507_v44 = vrot.slane %v2161_v41, %v3694_v6  ;;  %v2199_v61 = vadd.f32 %v2198_v46, %v2197_v32 }
 0x5f1   : > { %v2223_v30 = vadd.f32 %v2222_v48, %v2221_v8 }
 0x5f2   : > { %v2204_v49 = vrot.slane %v2203_v43, 2  ;;  %v2208_v17 = vrot.slane %v2190_v59, 4  ;;  %v2529_v50 = vsel %vm1941_vm1, %v2507_v44, %v2528_v35  ;;  %v2200_v53 = vrot.slane %v2199_v61, 1 }
 0x5f3   : > { %v2166_v52 = vpop.permute.xlu1 %2165  ;;  %v2224_v4 = vrot.slane %v2223_v30, 1 }
 0x5f4   : > { %v2209_v38 = vadd.f32 %v2208_v17, %v2190_v59  ;;  %v2191_v56 = vmul.f32 %v2166_v52, %v3635_v13  ;;  %v2511_v58 = vrot.slane %v2166_v52, %v3694_v6  ;;  %v2205_v62 = vadd.f32 %v2204_v49, %v2203_v43 }
 0x5f5   : > { %v2201_v18 = vadd.f32 %v2200_v53, %v2199_v61  ;;  %v2225_v42 = vadd.f32 %v2224_v4, %v2223_v30 }
 0x5f6   : > { %v2210_v0 = vrot.slane %v2209_v38, 2  ;;  %v2214_v1 = vrot.slane %v2191_v56, 4  ;;  %v2530_v5 = vsel %vm1943_vm2, %v2511_v58, %v2529_v50  ;;  %v2206_v60 = vrot.slane %v2205_v62, 1 }
 0x5f7   : > { %v2176_v7 = vpop.permute.xlu1 %2175  ;;  %v2531_v11 = vsel %vm1945_vm3, %v2515_v3, %v2530_v5  ;;  %v2244_v28 = vpack.c.bf16 %v2201_v18, %v2201_v18 }
 0x5f8   : > { %v2211_v51 = vadd.f32 %v2210_v0, %v2209_v38  ;;  %v2215_v10 = vadd.f32 %v2214_v1, %v2191_v56  ;;  %v2193_v12 = vmul.f32 %v2176_v7, %v3649_v9  ;;  %v2519_v13 = vrot.slane %v2176_v7, %v3694_v6 }
 0x5f9   : > { %v2207_v16 = vadd.f32 %v2206_v60, %v2205_v62  ;;  %v2276_v49 = vunpack.c.l.b16 %v2244_v28  ;;  %v2248_v38 = vpack.c.bf16 %v2225_v42, %v2225_v42  ;;  %v3152_v60 = vld [vmem:[%s3868_s10 + $0x20] sm:$0xff]  }
 0x5fa   : > { %v2212_v15 = vrot.slane %v2211_v51, 1  ;;  %v2216_v39 = vrot.slane %v2215_v10, 2  ;;  %v2226_v36 = vrot.slane %v2193_v12, 4  ;;  %v2532_v37 = vsel %vm1947_vm4, %v2519_v13, %v2531_v11  ;;  %2857 = vmatpush3.bf16.msra.mxu0 %v3152_v60 }
 0x5fb   : > { %v2181_v40 = vpop.permute.xlu1 %2180  ;;  %v2245_v23 = vpack.c.bf16 %v2207_v16, %v2207_v16  ;;  %v2280_v5 = vunpack.c.l.b16 %v2248_v38  ;;  %2858 = vmatprep.subr.bf16.mxu0 %v3290_v55 }
 0x5fc   : > { %v2194_v45 = vmul.f32 %v2181_v40, %v3656_v22  ;;  %v2523_v47 = vrot.slane %v2181_v40, %v3694_v6  ;;  %v2217_v14 = vadd.f32 %v2216_v39, %v2215_v10  ;;  %v2227_v29 = vadd.f32 %v2226_v36, %v2193_v12  ;;  %v3154_v39 = vld [vmem:[%s3868_s10 + $0x10] sm:$0xff]   ;;  %v3155_v36 = vld [vmem:[%s3868_s10 + $0x8] sm:$0xff]  }
 0x5fd   : > { %v2213_v27 = vadd.f32 %v2212_v15, %v2211_v51  ;;  %v2277_v59 = vunpack.c.l.b16 %v2245_v23  ;;  %v3153_v15 = vld [vmem:[%s3868_s10 + $0x18] sm:$0xff]  }
 0x5fe   : > { %v2232_v57 = vrot.slane %v2194_v45, 4  ;;  %v3816_v9 = vsel %vm1949_vm5, %v2523_v47, %v2532_v37  ;;  %v2218_v34 = vrot.slane %v2217_v14, 1  ;;  %v2228_v63 = vrot.slane %v2227_v29, 2  ;;  %2859 = vmatpush3.bf16.msra.mxu0 %v3153_v15  ;;  %v3156_v37 = vld [vmem:[%s3868_s10] sm:$0xff]  }
 0x5ff   : > { %v3818_v19 = vpop.permute.xlu1 %2185  ;;  %v2246_v31 = vpack.c.bf16 %v2213_v27, %v2213_v27  ;;  %v2284_v56 = vsel %vm1939_vm0, %v2277_v59, %v2276_v49  ;;  %2860 = vmatprep.subr.bf16.mxu0 %v3290_v55 }
 0x600   : > { %v2233_v20 = vadd.f32 %v2232_v57, %v2194_v45  ;;  %v2195_v22 = vmul.f32 %v3818_v19, %v3663_v25  ;;  %v2219_v2 = vadd.f32 %v2218_v34, %v2217_v14  ;;  %v2229_v21 = vadd.f32 %v2228_v63, %v2227_v29  ;;  %v2801_v57 = vld [vmem:[#allocation8] ss:$0 sm:$0xff] }
 0x601   : > { %v2278_v17 = vunpack.c.l.b16 %v2246_v31 }
 0x602   : > { %v2234_v24 = vrot.slane %v2233_v20, 2  ;;  %v2238_v26 = vrot.slane %v2195_v22, 4  ;;  %v2230_v32 = vrot.slane %v2229_v21, 1  ;;  %v2247_v33 = vpack.c.bf16 %v2219_v2, %v2219_v2  ;;  %2861 = vmatpush3.bf16.msra.mxu0 %v3154_v39 }
 0x603   : > { %v2285_v62 = vsel %vm1941_vm1, %v2278_v17, %v2284_v56  ;;  %2862 = vmatprep.subr.bf16.mxu0 %v3290_v55 }
 0x604   : > { %v2235_v35 = vadd.f32 %v2234_v24, %v2233_v20  ;;  %v2239_v41 = vadd.f32 %v2238_v26, %v2195_v22  ;;  %v2231_v43 = vadd.f32 %v2230_v32, %v2229_v21  ;;  %v2279_v25 = vunpack.c.l.b16 %v2247_v33 }
 0x605   : > { %v2527_v20 = vrot.slane %v3818_v19, %v3694_v6 }
 0x606   : > { %v2236_v44 = vrot.slane %v2235_v35, 1  ;;  %v2240_v46 = vrot.slane %v2239_v41, 2  ;;  %v2249_v50 = vpack.c.bf16 %v2231_v43, %v2231_v43  ;;  %v2286_v0 = vsel %vm1943_vm2, %v2279_v25, %v2285_v62  ;;  %2863 = vmatpush3.bf16.msra.mxu0 %v3155_v36 }
 0x607   : > { %v2287_v51 = vsel %vm1945_vm3, %v2280_v5, %v2286_v0  ;;  %2864 = vmatprep.subr.bf16.mxu0 %v3290_v55 }
 0x608   : > { %v2237_v52 = vadd.f32 %v2236_v44, %v2235_v35  ;;  %v2241_v8 = vadd.f32 %v2240_v46, %v2239_v41  ;;  %v2281_v3 = vunpack.c.l.b16 %v2249_v50 }
 0x60a   : > { %v2250_v58 = vpack.c.bf16 %v2237_v52, %v2237_v52  ;;  %v2242_v61 = vrot.slane %v2241_v8, 1  ;;  %v2288_v11 = vsel %vm1947_vm4, %v2281_v3, %v2287_v51  ;;  %2865 = vmatpush3.bf16.msra.mxu0 %v3156_v37 }
 0x60c   : > { %v2243_v1 = vadd.f32 %v2242_v61, %v2241_v8  ;;  %v2282_v7 = vunpack.c.l.b16 %v2250_v58 }
 0x60e   : > { %v2251_v48 = vpack.c.bf16 %v2243_v1, %v2243_v1  ;;  %v2289_v12 = vsel %vm1949_vm5, %v2282_v7, %v2288_v11 }
 0x610   : > { %v2283_v10 = vunpack.c.l.b16 %v2251_v48 }
 0x612   : > { %v2290_v13 = vsel %vm1951_vm6, %v2283_v10, %v2289_v12 }
 0x613   : > { %v2291_v53 = vpack.c.b16 %v2290_v13, %v2290_v13 }
 0x615   : > { %2847 = vmatmul.mubr.bf16.vlgmr.msra.gmra.mxu1 %v2291_v53 }
 0x6d5   : > { %v2375_v40 = vpop.f32.mrf.mxu1 }
 0x6d6   : > { %v2376_v45 = vadd.f32 %v2375_v40, %v3609_v54  ;;  %v2534_v54 = vsel %vm1951_vm6, %v2527_v20, %v3816_v9 }
 0x6d7   : > { %v2848_v47 = vpop.f32.mrf.mxu1 }
 0x6d8   : > { %3185 = vtanh.f32 %v2376_v45 }
 0x6d9   : > { %v2378_v30 = vpop.f32.mrf.mxu1 }
 0x6db   : > { %v2849_v14 = vpop.f32.mrf.mxu1 }
 0x6e5   : > { %v3186_v29 = vpop.eup %3185 }
 0x6e6   : > { %v2382_v16 = vpack.c.bf16 %v3186_v29, %v3186_v29 }
 0x6e8   : > { %2867 = vmatmul.mubr.bf16.vlgmr.msra.gmra.mxu0 %v2382_v16 }
 0x7a8   : > { %v2488_v18 = vpop.f32.mrf.mxu0 }
 0x7a9   : > { %v2489_v27 = vadd.f32 %v2801_v57, %v2488_v18 }
 0x7aa   : > { %v2868_v34 = vpop.f32.mrf.mxu0 }
 0x7ab   : > { %2537 = vrot.lane.b32.xlu1 %v2489_v27, %s3292_s25 }
 0x7ac   : > { %v2491_v63 = vpop.f32.mrf.mxu0 }
 0x7ae   : > { %v2869_v55 = vpop.f32.mrf.mxu0 }
 0x81d   : > { %v2538_v22 = vpop.permute.xlu1 %2537 }
 0x81e   : > { %v2540_v4 = vsel %vm1954_vm7, %v2534_v54, %v2538_v22 }
 0x81f   : > { %v2542_v2 = vsel %vm2541_vm9, %v2540_v4, 0.0 }
 0x820   : > { %2545 = vst [vmem:[%s3438_s19 + $0x10] sm:$0xff] %v2542_v2 }
 0x821 PF: > { %s24_s21 = sadd.s32 1, %s3279_s21  }
 0x822   : > { %p21_p2 = scmp.ge.s32.totalorder %s24_s21, 6  }
 0x824   :  { %23 = sbr.rel (!%p21_p2) target bundleno = 2 (0x2), region = 115 }
 0x829   :  { %2567 = vsyncpa [#allocation5], 1 }
 0x82a   :  { %2569 = vsyncpa [#allocation5 + $0x1], 1 }
 0x82b   :  { %2570 = vsyncpa [#allocation7], 1 }

</bundles_post_ra>
